<compile_context>
chip_gen: v7x
topology: tpu7x:2x2x1
jax: 0.10.0
libtpu: 0.0.40
codegen_flags: <defaults>
</compile_context>

<pallas_src>
import math
import numpy as np
import jax
import jax.numpy as jnp
from jax.experimental import pallas as pl
from jax.experimental.pallas import tpu as pltpu


def _as_triple(v):
    if isinstance(v, (list, tuple)):
        assert len(v) == 3, "need one value per spatial axis"
        return [v[0], v[1], v[2]]
    return [v, v, v]


def _ceil_to(a, m):
    return ((a + m - 1) // m) * m


def _gaussian_taps_1d(kernel_size, sigma):
    """Normalized 1-D Gaussian taps (Python floats, baked into the kernel)."""
    k = int(kernel_size)
    mean = (k - 1) / 2.0
    g = np.exp(-0.5 * ((np.arange(k, dtype=np.float64) - mean) / float(sigma)) ** 2)
    g = g / g.sum()
    return [float(v) for v in g]


def make_gaussian_kernel_3d(kernel_size, sigma):
    """Mirror of survos2 make_kernel(kernel_size, sigma, dim=3); used only for the
    reference check (the Pallas kernel uses the equivalent separable taps)."""
    ks = [int(s) for s in _as_triple(kernel_size)]
    sg = [float(s) for s in _as_triple(sigma)]
    grids = np.meshgrid(*[np.arange(s, dtype=np.float32) for s in ks], indexing="ij")
    kernel = np.ones((), dtype=np.float32)
    for size, std, mg in zip(ks, sg, grids):
        mean = (size - 1) / 2.0
        kernel = kernel * (
            1.0 / (std * math.sqrt(2.0 * math.pi))
            * np.exp(-(((mg - mean) / std) ** 2) / 2.0))
    kernel = kernel / kernel.sum()
    return jnp.asarray(kernel, dtype=jnp.float32)   # (kd, kh, kw)


def _band_matrix(taps, in_dim, out_dim):
    """Toeplitz band B (in_dim, out_dim): out[..., j] = sum_dx taps[dx]*in[..., j+dx]."""
    b = np.zeros((in_dim, out_dim), dtype=np.float32)
    for j in range(out_dim):
        for dx in range(len(taps)):
            if j + dx < in_dim:
                b[j + dx, j] = taps[dx]
    return jnp.asarray(b)


def _acc_taps(slices, taps):
    """sum_j taps[j]*slices[j]; exploits symmetric (Gaussian) taps and uses two
    partial accumulators for VALU ILP."""
    k = len(taps)
    symmetric = all(abs(taps[j] - taps[k - 1 - j]) < 1e-12 for j in range(k // 2))
    terms = []
    if symmetric:
        for j in range(k // 2):
            terms.append(taps[j] * (slices[j] + slices[k - 1 - j]))
        if k % 2 == 1:
            terms.append(taps[k // 2] * slices[k // 2])
    else:
        terms = [taps[j] * slices[j] for j in range(k)]
    acc0 = terms[0]
    if len(terms) == 1:
        return acc0
    acc1 = terms[1]
    for j in range(2, len(terms)):
        if j % 2 == 0:
            acc0 = acc0 + terms[j]
        else:
            acc1 = acc1 + terms[j]
    return acc0 + acc1


def _physical_vmem_bytes():
    try:
        return int(pltpu.get_tpu_info().vmem_capacity_bytes)
    except Exception:
        return 64 * 1024 * 1024   # conservative fallback (v7x per-core VMEM)


def gaussian_smoothing_3d(x, kernel_size, sigma, *, tile_d=None):
    """Depthwise 'valid' 3-D Gaussian convolution of x (NCDHW) on TPU via Pallas."""
    N, C, D, H, W = x.shape
    ks = [int(s) for s in _as_triple(kernel_size)]
    sg = [float(s) for s in _as_triple(sigma)]
    kd, kh, kw = ks
    Do, Ho, Wo = D - kd + 1, H - kh + 1, W - kw + 1
    assert Do >= 1 and Ho >= 1 and Wo >= 1, "kernel larger than input"

    taps_d = _gaussian_taps_1d(kd, sg[0])
    taps_h = _gaussian_taps_1d(kh, sg[1])
    taps_w = _gaussian_taps_1d(kw, sg[2])

    # Layout: sublane-aligned H (x8), lane-dense W (x128); lane/sublane-dense output.
    H_pad = _ceil_to(H, 8)
    W_pad = _ceil_to(W, 128)
    Ho_out = _ceil_to(Ho, 8)
    Wo_out = _ceil_to(Wo, 128)
    # H extent needed so the (kh-1) sublane-offset slices that produce Ho_out rows
    # stay in bounds; the extra (>= H_pad) rows are zero-extended inside the kernel.
    H_ext = _ceil_to(Ho_out + kh - 1, 8)

    hd = max(kd - 1, 1)                      # halo depth (second view of the input)
    in_b = x.dtype.itemsize
    out_b = in_b

    # --- generation-aware tile sizing ------------------------------------------
    phys_vmem = _physical_vmem_bytes()
    vmem_limit = phys_vmem // 2              # ~32 MiB on v7x, ~64 MiB on v5e/v6e
    tile_budget = (vmem_limit * 3) // 4      # headroom for compiler temporaries

    plane_in = H_pad * W_pad * in_b
    plane_f32 = H_pad * W_pad * 4
    plane_out = Ho_out * Wo_out * out_b
    # per extra output-depth row: 2x double-buffered input + 2x output + ~3 pass temps
    per_row = 2 * plane_in + 2 * plane_out + 3 * plane_f32
    fixed = 2 * hd * plane_in + 2 * W_pad * Wo_out * 4

    if tile_d is None:
        tD = max(hd, ((tile_budget - fixed) // per_row) // hd * hd)
        tD = min(tD, _ceil_to(Do, hd))
        # v7x has two TensorCores: expose >= 2 parallel D tiles for single volumes.
        if N * C == 1 and Do > hd:
            tD = min(tD, _ceil_to(-(-Do // 2), hd))
        tD = max(tD, hd)
    else:
        assert tile_d >= hd and tile_d % hd == 0, "tile_d must be a multiple of max(kd-1,1)"
        tD = int(tile_d)

    n_tiles = -(-Do // tD)
    D_main = n_tiles * tD                    # output depth actually written (>= Do)
    D_pad = D_main + hd                      # input depth incl. halo of the last tile
    halo_mult = tD // hd

    # Trailing zero-pad (values never reach valid output rows/cols); skipped when
    # the input is already aligned and the D tiling needs no extra rows.
    pd, ph, pw = D_pad - D, H_pad - H, W_pad - W
    if pd or ph or pw:
        xp = jnp.pad(x, ((0, 0), (0, 0), (0, pd), (0, ph), (0, pw)))
    else:
        xp = x

    bw = _band_matrix(taps_w, W_pad, Wo_out)   # constant Toeplitz band for the W pass

    def kernel(xm_ref, xh_ref, bw_ref, o_ref):
        # xm_ref: (tD, H_pad, W_pad)   main D-slab of the input tile
        # xh_ref: (hd, H_pad, W_pad)   halo rows just below the main slab
        # bw_ref: (W_pad, Wo_out)      Toeplitz band of W taps (resident)
        # o_ref : (tD, Ho_out, Wo_out) lane/sublane-dense output tile

        def d_slab(dz):
            if dz == 0:
                v = xm_ref[...]
            elif dz == tD:                        # only when tD == kd-1
                v = xh_ref[...]
            else:
                v = jnp.concatenate([xm_ref[dz:tD, :, :], xh_ref[0:dz, :, :]], axis=0)
            return v.astype(jnp.float32)

        # D pass (VPU): leading-axis slices of the virtual main+halo slab.
        t = _acc_taps([d_slab(dz) for dz in range(kd)], taps_d)      # (tD,H_pad,W_pad)

        # W pass (MXU): valid conv along lanes == matmul with the Toeplitz band.
        t = jax.lax.dot_general(
            t.reshape(tD * H_pad, W_pad), bw_ref[...],
            (((1,), (0,)), ((), ())),
            preferred_element_type=jnp.float32,
            precision=jax.lax.Precision.HIGHEST,
        ).reshape(tD, H_pad, Wo_out)

        # H pass (VPU/XLU): zero-extend the sublane axis so the padded
        # (sublane-dense) output rows stay in bounds, then sublane-offset slices.
        if H_ext > H_pad:
            t = jnp.concatenate(
                [t, jnp.zeros((tD, H_ext - H_pad, Wo_out), jnp.float32)], axis=1)
        t = _acc_taps([t[:, dy:dy + Ho_out, :] for dy in range(kh)], taps_h)

        o_ref[...] = t.astype(o_ref.dtype)

    out = pl.pallas_call(
        kernel,
        out_shape=jax.ShapeDtypeStruct((N, C, D_main, Ho_out, Wo_out), x.dtype),
        grid=(N, C, n_tiles),
        in_specs=[
            pl.BlockSpec((None, None, tD, H_pad, W_pad),
                         lambda n, c, i: (n, c, i, 0, 0)),
            pl.BlockSpec((None, None, hd, H_pad, W_pad),
                         lambda n, c, i: (n, c, (i + 1) * halo_mult, 0, 0)),
            pl.BlockSpec((W_pad, Wo_out), lambda n, c, i: (0, 0)),
        ],
        out_specs=pl.BlockSpec((None, None, tD, Ho_out, Wo_out),
                               lambda n, c, i: (n, c, i, 0, 0)),
        compiler_params=pltpu.CompilerParams(
            dimension_semantics=("parallel", "parallel", "parallel"),
            vmem_limit_bytes=vmem_limit,
        ),
    )(xp, xp, bw)   # same array twice: main-tile view + halo view

    if (D_main, Ho_out, Wo_out) != (Do, Ho, Wo):
        out = out[:, :, :Do, :Ho, :Wo]
    return out


def _reference_conv3d_depthwise(x, weight3d):
    """Pure-JAX reference: F.conv3d(x, depthwise weight, groups=C), valid padding."""
    N, C, D, H, W = x.shape
    kd, kh, kw = weight3d.shape
    w = jnp.broadcast_to(weight3d[None, None], (C, 1, kd, kh, kw))
    return jax.lax.conv_general_dilated(
        x, w,
        window_strides=(1, 1, 1),
        padding="VALID",
        dimension_numbers=("NCDHW", "OIDHW", "NCDHW"),
        feature_group_count=C,
        precision=jax.lax.Precision.HIGHEST)


if __name__ == "__main__":
    # Module config consistent with its registered (1,1,k,k,k) weight: channels=1.
    channels, kernel_size, sigma = 1, 5, 1.0
    N, D, H, W = 2, 16, 16, 16

    key = jax.random.PRNGKey(0)
    x = jax.random.normal(key, (N, channels, D, H, W), dtype=jnp.float32)

    out = jax.block_until_ready(gaussian_smoothing_3d(x, kernel_size, sigma))

    ref = jax.block_until_ready(
        _reference_conv3d_depthwise(x, make_gaussian_kernel_3d(kernel_size, sigma)))
    expected = (N, channels, D - kernel_size + 1,
                H - kernel_size + 1, W - kernel_size + 1)
    assert out.shape == expected, out.shape
    assert np.allclose(np.asarray(out), np.asarray(ref), atol=1e-4, rtol=1e-4), \
        "mismatch vs reference (auto-tile path)"

    # Multi-tile halo path (partial last D-tile + padded tail).
    out2 = jax.block_until_ready(gaussian_smoothing_3d(x, kernel_size, sigma, tile_d=8))
    assert np.allclose(np.asarray(out2), np.asarray(ref), atol=1e-4, rtol=1e-4), \
        "mismatch vs reference (multi-tile halo path)"

    # Minimal-tile path (tD == kd-1 exercises the halo-only D slice).
    out3 = jax.block_until_ready(gaussian_smoothing_3d(x, kernel_size, sigma, tile_d=4))
    assert np.allclose(np.asarray(out3), np.asarray(ref), atol=1e-4, rtol=1e-4), \
        "mismatch vs reference (minimal-tile path)"

    print("KERNEL_OK")
</pallas_src>

<mosaic_0001>
module attributes {stable_mosaic.version = 11 : i64} {
  func.func @kernel(%arg0: i32, %arg1: i32, %arg2: i32, %arg3: memref<1x1x12x16x128xf32, #tpu.memory_space<vmem>>, %arg4: memref<1x1x4x16x128xf32, #tpu.memory_space<vmem>>, %arg5: memref<128x128xf32, #tpu.memory_space<vmem>>, %arg6: memref<1x1x12x16x128xf32, #tpu.memory_space<vmem>>) attributes {dimension_semantics = [#tpu.dimension_semantics<parallel>, #tpu.dimension_semantics<parallel>, #tpu.dimension_semantics<parallel>], iteration_bounds = array<i64: 2, 1, 1>, scalar_prefetch = 0 : i64, scratch_operands = 0 : i64, tpu.core_type = #tpu.core_type<tc>, window_params = [{transform_indices = @transform_0, window_bounds = array<i64: 1, 1, 12, 16, 128>}, {transform_indices = @transform_1, window_bounds = array<i64: 1, 1, 4, 16, 128>}, {pipeline_mode = #tpu.pipeline_mode<synchronous>, transform_indices = @transform_2, window_bounds = array<i64: 128, 128>}, {transform_indices = @transform_3, window_bounds = array<i64: 1, 1, 12, 16, 128>}]} {
    %c0 = arith.constant 0 : index
    %c0_0 = arith.constant 0 : index
    %c0_1 = arith.constant 0 : index
    %c0_2 = arith.constant 0 : index
    %c0_3 = arith.constant 0 : index
    %0 = vector.load %arg3[%c0, %c0_0, %c0_1, %c0_2, %c0_3] : memref<1x1x12x16x128xf32, #tpu.memory_space<vmem>>, vector<1x1x12x16x128xf32>
    %1 = vector.shape_cast %0 : vector<1x1x12x16x128xf32> to vector<12x16x128xf32>
    %c0_4 = arith.constant 0 : index
    %c0_5 = arith.constant 0 : index
    %c1 = arith.constant 1 : index
    %c0_6 = arith.constant 0 : index
    %c0_7 = arith.constant 0 : index
    %2 = vector.load %arg3[%c0_4, %c0_5, %c1, %c0_6, %c0_7] : memref<1x1x12x16x128xf32, #tpu.memory_space<vmem>>, vector<1x1x11x16x128xf32>
    %3 = vector.shape_cast %2 : vector<1x1x11x16x128xf32> to vector<11x16x128xf32>
    %c0_8 = arith.constant 0 : index
    %c0_9 = arith.constant 0 : index
    %c0_10 = arith.constant 0 : index
    %c0_11 = arith.constant 0 : index
    %c0_12 = arith.constant 0 : index
    %4 = vector.load %arg4[%c0_8, %c0_9, %c0_10, %c0_11, %c0_12] : memref<1x1x4x16x128xf32, #tpu.memory_space<vmem>>, vector<1x1x1x16x128xf32>
    %5 = vector.shape_cast %4 : vector<1x1x1x16x128xf32> to vector<1x16x128xf32>
    %6 = tpu.concatenate %3, %5 in 0 : vector<11x16x128xf32>, vector<1x16x128xf32> -> vector<12x16x128xf32>
    %c0_13 = arith.constant 0 : index
    %c0_14 = arith.constant 0 : index
    %c2 = arith.constant 2 : index
    %c0_15 = arith.constant 0 : index
    %c0_16 = arith.constant 0 : index
    %7 = vector.load %arg3[%c0_13, %c0_14, %c2, %c0_15, %c0_16] : memref<1x1x12x16x128xf32, #tpu.memory_space<vmem>>, vector<1x1x10x16x128xf32>
    %8 = vector.shape_cast %7 : vector<1x1x10x16x128xf32> to vector<10x16x128xf32>
    %c0_17 = arith.constant 0 : index
    %c0_18 = arith.constant 0 : index
    %c0_19 = arith.constant 0 : index
    %c0_20 = arith.constant 0 : index
    %c0_21 = arith.constant 0 : index
    %9 = vector.load %arg4[%c0_17, %c0_18, %c0_19, %c0_20, %c0_21] : memref<1x1x4x16x128xf32, #tpu.memory_space<vmem>>, vector<1x1x2x16x128xf32>
    %10 = vector.shape_cast %9 : vector<1x1x2x16x128xf32> to vector<2x16x128xf32>
    %11 = tpu.concatenate %8, %10 in 0 : vector<10x16x128xf32>, vector<2x16x128xf32> -> vector<12x16x128xf32>
    %c0_22 = arith.constant 0 : index
    %c0_23 = arith.constant 0 : index
    %c3 = arith.constant 3 : index
    %c0_24 = arith.constant 0 : index
    %c0_25 = arith.constant 0 : index
    %12 = vector.load %arg3[%c0_22, %c0_23, %c3, %c0_24, %c0_25] : memref<1x1x12x16x128xf32, #tpu.memory_space<vmem>>, vector<1x1x9x16x128xf32>
    %13 = vector.shape_cast %12 : vector<1x1x9x16x128xf32> to vector<9x16x128xf32>
    %c0_26 = arith.constant 0 : index
    %c0_27 = arith.constant 0 : index
    %c0_28 = arith.constant 0 : index
    %c0_29 = arith.constant 0 : index
    %c0_30 = arith.constant 0 : index
    %14 = vector.load %arg4[%c0_26, %c0_27, %c0_28, %c0_29, %c0_30] : memref<1x1x4x16x128xf32, #tpu.memory_space<vmem>>, vector<1x1x3x16x128xf32>
    %15 = vector.shape_cast %14 : vector<1x1x3x16x128xf32> to vector<3x16x128xf32>
    %16 = tpu.concatenate %13, %15 in 0 : vector<9x16x128xf32>, vector<3x16x128xf32> -> vector<12x16x128xf32>
    %c0_31 = arith.constant 0 : index
    %c0_32 = arith.constant 0 : index
    %c4 = arith.constant 4 : index
    %c0_33 = arith.constant 0 : index
    %c0_34 = arith.constant 0 : index
    %17 = vector.load %arg3[%c0_31, %c0_32, %c4, %c0_33, %c0_34] : memref<1x1x12x16x128xf32, #tpu.memory_space<vmem>>, vector<1x1x8x16x128xf32>
    %18 = vector.shape_cast %17 : vector<1x1x8x16x128xf32> to vector<8x16x128xf32>
    %c0_35 = arith.constant 0 : index
    %c0_36 = arith.constant 0 : index
    %c0_37 = arith.constant 0 : index
    %c0_38 = arith.constant 0 : index
    %c0_39 = arith.constant 0 : index
    %19 = vector.load %arg4[%c0_35, %c0_36, %c0_37, %c0_38, %c0_39] : memref<1x1x4x16x128xf32, #tpu.memory_space<vmem>>, vector<1x1x4x16x128xf32>
    %20 = vector.shape_cast %19 : vector<1x1x4x16x128xf32> to vector<4x16x128xf32>
    %21 = tpu.concatenate %18, %20 in 0 : vector<8x16x128xf32>, vector<4x16x128xf32> -> vector<12x16x128xf32>
    %22 = arith.addf %1, %21 : vector<12x16x128xf32>
    %cst = arith.constant 0.054488685 : f32
    %23 = vector.broadcast %cst : f32 to vector<12x16x128xf32>
    %24 = arith.mulf %23, %22 : vector<12x16x128xf32>
    %25 = arith.addf %6, %16 : vector<12x16x128xf32>
    %cst_40 = arith.constant 0.244201347 : f32
    %26 = vector.broadcast %cst_40 : f32 to vector<12x16x128xf32>
    %27 = arith.mulf %26, %25 : vector<12x16x128xf32>
    %cst_41 = arith.constant 0.402619958 : f32
    %28 = vector.broadcast %cst_41 : f32 to vector<12x16x128xf32>
    %29 = arith.mulf %28, %11 : vector<12x16x128xf32>
    %30 = arith.addf %24, %29 : vector<12x16x128xf32>
    %31 = arith.addf %30, %27 : vector<12x16x128xf32>
    %32 = vector.shape_cast %31 : vector<12x16x128xf32> to vector<192x128xf32>
    %c0_42 = arith.constant 0 : index
    %c0_43 = arith.constant 0 : index
    %33 = vector.load %arg5[%c0_42, %c0_43] : memref<128x128xf32, #tpu.memory_space<vmem>>, vector<128x128xf32>
    %cst_44 = arith.constant dense<0.000000e+00> : vector<192x128xf32>
    %34 = tpu.matmul %32, %33, %cst_44 {dimension_numbers = #tpu.dot_dimension_numbers<[1], [0], [0], [1], [0, 0, 1, 1], [], []>, precision = #tpu.contract_precision<fp32>} : vector<192x128xf32>, vector<128x128xf32>, vector<192x128xf32> -> vector<192x128xf32>
    %35 = vector.shape_cast %34 : vector<192x128xf32> to vector<12x16x128xf32>
    %cst_45 = arith.constant 0.000000e+00 : f32
    %36 = vector.broadcast %cst_45 : f32 to vector<12x8x128xf32>
    %37 = tpu.concatenate %35, %36 in 1 : vector<12x16x128xf32>, vector<12x8x128xf32> -> vector<12x24x128xf32>
    %38 = vector.extract_strided_slice %37 {offsets = [0, 0, 0], sizes = [12, 16, 128], strides = [1, 1, 1]} : vector<12x24x128xf32> to vector<12x16x128xf32>
    %39 = vector.extract_strided_slice %37 {offsets = [0, 1, 0], sizes = [12, 16, 128], strides = [1, 1, 1]} : vector<12x24x128xf32> to vector<12x16x128xf32>
    %40 = vector.extract_strided_slice %37 {offsets = [0, 2, 0], sizes = [12, 16, 128], strides = [1, 1, 1]} : vector<12x24x128xf32> to vector<12x16x128xf32>
    %41 = vector.extract_strided_slice %37 {offsets = [0, 3, 0], sizes = [12, 16, 128], strides = [1, 1, 1]} : vector<12x24x128xf32> to vector<12x16x128xf32>
    %42 = vector.extract_strided_slice %37 {offsets = [0, 4, 0], sizes = [12, 16, 128], strides = [1, 1, 1]} : vector<12x24x128xf32> to vector<12x16x128xf32>
    %43 = arith.addf %38, %42 : vector<12x16x128xf32>
    %cst_46 = arith.constant 0.054488685 : f32
    %44 = vector.broadcast %cst_46 : f32 to vector<12x16x128xf32>
    %45 = arith.mulf %44, %43 : vector<12x16x128xf32>
    %46 = arith.addf %39, %41 : vector<12x16x128xf32>
    %cst_47 = arith.constant 0.244201347 : f32
    %47 = vector.broadcast %cst_47 : f32 to vector<12x16x128xf32>
    %48 = arith.mulf %47, %46 : vector<12x16x128xf32>
    %cst_48 = arith.constant 0.402619958 : f32
    %49 = vector.broadcast %cst_48 : f32 to vector<12x16x128xf32>
    %50 = arith.mulf %49, %40 : vector<12x16x128xf32>
    %51 = arith.addf %45, %50 : vector<12x16x128xf32>
    %52 = arith.addf %51, %48 : vector<12x16x128xf32>
    %c0_49 = arith.constant 0 : index
    %c0_50 = arith.constant 0 : index
    %c0_51 = arith.constant 0 : index
    %c0_52 = arith.constant 0 : index
    %c0_53 = arith.constant 0 : index
    %53 = vector.load %arg6[%c0_49, %c0_50, %c0_51, %c0_52, %c0_53] : memref<1x1x12x16x128xf32, #tpu.memory_space<vmem>>, vector<1x1x12x16x128xf32>
    %54 = vector.shape_cast %53 : vector<1x1x12x16x128xf32> to vector<12x16x128xf32>
    %55 = vector.shape_cast %52 : vector<12x16x128xf32> to vector<1x1x12x16x128xf32>
    tpu.vector_store %arg6[%c0_49, %c0_50, %c0_51, %c0_52, %c0_53], %55 {strides = array<i32>} : memref<1x1x12x16x128xf32, #tpu.memory_space<vmem>>, vector<1x1x12x16x128xf32>,
    return
  }
  func.func @transform_0(%arg0: i32, %arg1: i32, %arg2: i32) -> (i32, i32, i32, i32, i32) {
    %c0_i32 = arith.constant 0 : i32
    %c0_i32_0 = arith.constant 0 : i32
    %c0_i32_1 = arith.constant 0 : i32
    return %arg0, %arg1, %arg2, %c0_i32, %c0_i32_0 : i32, i32, i32, i32, i32
  }
  func.func @transform_1(%arg0: i32, %arg1: i32, %arg2: i32) -> (i32, i32, i32, i32, i32) {
    %c1_i32 = arith.constant 1 : i32
    %0 = arith.addi %arg2, %c1_i32 : i32
    %c3_i32 = arith.constant 3 : i32
    %1 = arith.muli %0, %c3_i32 : i32
    %c0_i32 = arith.constant 0 : i32
    %c0_i32_0 = arith.constant 0 : i32
    %c0_i32_1 = arith.constant 0 : i32
    return %arg0, %arg1, %1, %c0_i32, %c0_i32_0 : i32, i32, i32, i32, i32
  }
  func.func @transform_2(%arg0: i32, %arg1: i32, %arg2: i32) -> (i32, i32) {
    %c0_i32 = arith.constant 0 : i32
    %c0_i32_0 = arith.constant 0 : i32
    %c0_i32_1 = arith.constant 0 : i32
    return %c0_i32, %c0_i32_0 : i32, i32
  }
  func.func @transform_3(%arg0: i32, %arg1: i32, %arg2: i32) -> (i32, i32, i32, i32, i32) {
    %c0_i32 = arith.constant 0 : i32
    %c0_i32_0 = arith.constant 0 : i32
    %c0_i32_1 = arith.constant 0 : i32
    return %arg0, %arg1, %arg2, %c0_i32, %c0_i32_0 : i32, i32, i32, i32, i32
  }
}

</mosaic_0001>

<bundles_post_ra>
// kernel: tpu_custom_call.1
= control target key start
LH: loop header
LB: loop body
LE: loop exit
PB: predicated region body
PF: predicated region fallthrough
CT: control target
= control target key end

     0   :  { %s5632_s0 = inlined_call_operand.hbm [shape: f32[2,1,16,16,128], index: 0, kind: input, shape index: {}]   ;;  %s5633_s1 = inlined_call_operand.hbm [shape: f32[2,1,16,16,128], index: 1, kind: input, shape index: {}]   ;;  %s5634_s2 = inlined_call_operand.hbm [shape: f32[128,128], index: 2, kind: input, shape index: {}]   ;;  %s5635_s3 = inlined_call_operand.hbm [shape: f32[2,1,12,16,128], index: 3, kind: output, shape index: {}]  }
   0x1   :  { %5701 = sst [smem:[#allocation44_spill]] %s5632_s0 }
   0x2   :  { %5702 = sst [smem:[#allocation45_spill]] %s5634_s2 }
   0x3   :  { %8 = vsyncpa [#allocation3], 0 }
   0x4   :  { %10 = vsyncpa [#allocation3 + $0x1], 0 }
   0x5   :  { %11 = vsyncpa [#allocation6], 0 }
   0x6   :  { %13 = vsyncpa [#allocation6 + $0x1], 0 }
   0x7   :  { %14 = vsyncpa [#allocation4], 0 }
   0x8   :  { %16 = vsyncpa [#allocation4 + $0x1], 0  ;;  %s4304_s12 = smov 0   ;;  %s4306_s13 = smov 0  }
   0x9   :  { %s4308_s14 = smov 0   ;;  %s4310_s15 = smov 0  }
   0xa   :  { %s4312_s16 = smov 0   ;;  %s4314_s17 = smov 0  }
   0xb LB: > { %s4335_s18 = sadd.s32 4294967295, %s4273_s17   ;;  %s2955_s19 = sadd.s32 4294967294, %s4273_s17   ;;  %s4273_s17 = sphi %s4314_s17, %s22_s17   ;;  %s4269_s16 = sphi %s4312_s16, %s5803_s16   ;;  %s4265_s15 = sphi %s4310_s15, %s5802_s15   ;;  %s4261_s14 = sphi %s4308_s14, %s5801_s14   ;;  %s4257_s13 = sphi %s4306_s13, %s5800_s13   ;;  %s4253_s12 = sphi %s4304_s12, %s5799_s12  }
   0xc   : > { %p65_p0 = scmp.ne.s32.totalorder %s4257_s13, %s4253_s12  ;;  %p5636_p1 = scmp.eq.s32.totalorder %s4335_s18, 0 }
   0xd   : > { %p154_p3 = scmp.eq.s32.totalorder %s2955_s19, 1  ;;  %p2956_p5 = scmp.ge.s32.totalorder %s4273_s17, 1 }
   0xe   : > { %p4344_p4 = por %p5636_p1, %p65_p0  ;;  %p161_p7 = scmp.lt.s32.totalorder %s4273_s17, 3 }
   0xf   : > { %p4349_p6 = por %p154_p3, %p65_p0  ;;  %s4275_s23 = smov [#allocation7]  }
  0x10   : > { %s5703_s20 = scalar_select %p4344_p4, 1, 0 }
  0x11   : > { %s5704_s21 = scalar_select %p4349_p6, 1, 0 }
  0x12   : > { %p4354_p8 = pnand %p2956_p5, %p161_p7  ;;  %s173_s24 = sshll.u32 %s4275_s23, 4  ;;  %s174_s24 = int_to_ptr.vmem [resolvable:$true] %s173_s24 }
  0x13   : > { %s41_s26 = sadd.s32 1, %s4269_s16  ;;  %s5707_s2 = sld [smem:[#allocation45_spill]] }
  0x14   : > { %s5705_s22 = scalar_select %p4354_p8, 1, 0 }
  0x15   : > { %p4021_p9 = pneg %p4354_p8 }
  0x17   : > { %p4363_p11 = pnand %p4021_p9, %p5636_p1 }
  0x19   : > { %s4094_s29 = scalar_lea.hbm %s5707_s2, 2048  ;;  %p4096_p13 = pneg %p4363_p11 }
  0x1a   : > { %p4095_p12 = scmp.ne.s32.totalorder %s5707_s2, %s4094_s29  ;;  %p4101_p5 = scmp.lt.u32.totalorder %s4094_s29, %s5707_s2 }
  0x1c   : > { %p4097_p0 = pnand %p4096_p13, %p4095_p12 }
  0x1e   : > { %p4098_p3 = pneg %p4097_p0 }
  0x20   : > { %p4103_p7 = pnand %p4101_p5, %p4098_p3 }
  0x22   : > { %4106 = shalt.err (!%p4103_p7)
}
  0x23   : > { %s4107_s7 = scalar_lea.vmem %s174_s24, 2048  ;;  %p4115_p2 = scmp.lt.s32.totalorder %s174_s24, %s174_s24 }
  0x24   : > { %p4108_p9 = scmp.ne.s32.totalorder %s174_s24, %s4107_s7  ;;  %p4116_p6 = scmp.lt.s32.totalorder %s4107_s7, %s4107_s7 }
  0x26   : > { %p4110_p10 = pnand %p4108_p9, %p4096_p13  ;;  %p4117_p4 = por %p4116_p6, %p4115_p2 }
  0x28   : > { %p4111_p1 = pneg %p4110_p10 }
  0x2a   : > { %p4118_p8 = pnand %p4117_p4, %p4111_p1 }
  0x2c   : > { %4121 = shalt.err (!%p4118_p8)
}
  0x2d   : > { %s5639_s8 = smov 128   ;;  %s5641_s9 = smov 8  }
  0x2e   : > { %4024 = dma.hbm_to_vmem [thread:$0]  (!%p4363_p11), %s5707_s2, 2048, %s174_s24, [#allocation6], %s5639_s8, %s5639_s8, %s5641_s9  }
  0x2f   : > { %p43_p1 = scmp.ge.s32.totalorder %s41_s26, 2  ;;  %s52_s19 = sadd.s32 1, %s4261_s14 }
  0x30   : > { %p59_p2 = scmp.ne.s32.totalorder %s4261_s14, %s4257_s13  ;;  %p60_p4 = scmp.eq.s32.totalorder %s4273_s17, 0 }
  0x31   : > { %s5805_s26 = smov (%p43_p1, %s41_s26), 0  ;;  %p5710_p8 = scmp.eq.s32.totalorder %s4335_s18, 1 }
  0x32   : > { %5708 = sst [smem:[#allocation13_spill]] %s5805_s26  ;;  %p4393_p6 = por %p60_p4, %p59_p2 }
  0x33   : > { %p4399_p10 = por %p5710_p8, %p59_p2  ;;  %s45_s27 = ssub.s32 %s4269_s16, %s5805_s26 }
  0x34   : > { %p4037_p11 = scmp.lt.s32.totalorder %s4273_s17, 2  ;;  %p50_p12 = scmp.eq.s32.totalorder %s45_s27, 0 }
  0x35   : > { %s4407_s24 = sand.u32 1, %s4261_s14   ;;  %s3046_s30 = sshll.u32 %s4269_s16, 12 }
  0x36   : > { %s4008_s28 = smul.u32 192, %s4407_s24  ;;  %s5712_s0 = sld [smem:[#allocation44_spill]] }
  0x37   : > { %s4411_s29 = scalar_select %p50_p12, %s4261_s14, %s52_s19  }
  0x38   : > { %s191_s7 = scalar_lea.vmem [#allocation2], %s4008_s28  ;;  %p4423_p13 = pnand %p4037_p11, %p4393_p6 }
  0x39   : > { %s211_s10 = sshll.u32 %s191_s7, 4  ;;  %s4430_s4 = scalar_lea.hbm %s5633_s1, %s3046_s30  ;;  %s4419_s10 = int_to_ptr.vmem [resolvable:$true] %s211_s10 }
  0x3a   : > { %s221_s5 = sand.u32 1, %s4273_s17   ;;  %s188_s8 = scalar_lea.sflag [#allocation3], %s4407_s24 }
  0x3b   : > { %p4124_p3 = pneg %p4423_p13 }
  0x3c   : > { %s4417_s6 = scalar_lea.hbm %s5712_s0, %s3046_s30  ;;  %s4127_s7 = scalar_lea.hbm %s5712_s0, 8192 }
  0x3d   : > { %s4122_s9 = scalar_lea.hbm %s4417_s6, 3072  ;;  %p4128_p9 = scmp.lt.u32.totalorder %s4417_s6, %s5712_s0 }
  0x3e   : > { %p4123_p0 = scmp.ne.s32.totalorder %s4417_s6, %s4122_s9  ;;  %p4129_p1 = scmp.lt.u32.totalorder %s4127_s7, %s4122_s9 }
  0x3f   : > { %p4131_p4 = scmp.lt.u32.totalorder %s4122_s9, %s4417_s6 }
  0x40   : > { %p4125_p5 = pnand %p4124_p3, %p4123_p0  ;;  %p4130_p2 = por %p4129_p1, %p4128_p9 }
  0x42   : > { %p4126_p7 = pneg %p4125_p5  ;;  %p4132_p6 = por %p4131_p4, %p4130_p2 }
  0x44   : > { %p4133_p8 = pnand %p4132_p6, %p4126_p7 }
  0x46   : > { %4136 = shalt.err (!%p4133_p8)
}
  0x47   : > { %s4137_s30 = scalar_lea.vmem %s4419_s10, 3072  ;;  %s4278_s27 = smov [#allocation2]  }
  0x48   : > { %p4138_p11 = scmp.ne.s32.totalorder %s4419_s10, %s4137_s30  ;;  %s4142_s23 = sshll.u32 %s4278_s27, 4  ;;  %s4143_s23 = int_to_ptr.vmem [resolvable:$false] %s4142_s23 }
  0x49   : > { %s4144_s2 = scalar_lea.vmem %s4143_s23, 6144  ;;  %p4145_p5 = scmp.lt.s32.totalorder %s4419_s10, %s4143_s23 }
  0x4a   : > { %p4140_p12 = pnand %p4138_p11, %p4124_p3  ;;  %p4146_p9 = scmp.lt.s32.totalorder %s4144_s2, %s4137_s30 }
  0x4c   : > { %p4141_p0 = pneg %p4140_p12  ;;  %p4147_p1 = por %p4146_p9, %p4145_p5 }
  0x4e   : > { %p4148_p2 = pnand %p4147_p1, %p4141_p0 }
  0x50   : > { %4151 = shalt.err (!%p4148_p2)
}
  0x51   : > { %s5714_s9 = smov 8   ;;  %s5715_s28 = smov 128  }
  0x52   : > { %4028 = dma.hbm_to_vmem [thread:$0]  (!%p4423_p13), %s4417_s6, 3072, %s4419_s10, %s188_s8, %s5715_s28, %s5715_s28, %s5714_s9  }
  0x53   : > { %s4465_s7 = scalar_lea.hbm %s4430_s4, 3072  ;;  %s2961_s19 = sshll.u32 %s4407_s24, 6 }
  0x54   : > { %s225_s30 = scalar_lea.vmem [#allocation5], %s2961_s19  ;;  %s4472_s23 = scalar_lea.sflag [#allocation6], %s221_s5 }
  0x55   : > { %s239_s27 = sshll.u32 %s225_s30, 4  ;;  %s4182_s2 = scalar_lea.hbm %s4430_s4, 4096  ;;  %s4468_s27 = int_to_ptr.vmem [resolvable:$true] %s239_s27 }
  0x56   : > { %p4153_p7 = scmp.ne.s32.totalorder %s4465_s7, %s4182_s2  ;;  %s4157_s10 = scalar_lea.hbm %s5633_s1, 8192 }
  0x57   : > { %p4158_p8 = scmp.lt.u32.totalorder %s4465_s7, %s5633_s1  ;;  %p4159_p11 = scmp.lt.u32.totalorder %s4157_s10, %s4182_s2 }
  0x58   : > { %p4155_p4 = pnand %p4153_p7, %p4124_p3  ;;  %p4161_p0 = scmp.lt.u32.totalorder %s4182_s2, %s4465_s7 }
  0x59   : > { %p4160_p12 = por %p4159_p11, %p4158_p8 }
  0x5a   : > { %p4156_p6 = pneg %p4155_p4 }
  0x5b   : > { %p4162_p5 = por %p4161_p0, %p4160_p12 }
  0x5d   : > { %p4163_p9 = pnand %p4162_p5, %p4156_p6 }
  0x5f   : > { %4166 = shalt.err (!%p4163_p9)
}
  0x60   : > { %s4167_s24 = scalar_lea.vmem %s4468_s27, 1024  ;;  %s4279_s4 = smov [#allocation5]  }
  0x61   : > { %p4168_p1 = scmp.ne.s32.totalorder %s4468_s27, %s4167_s24  ;;  %s4172_s5 = sshll.u32 %s4279_s4, 4  ;;  %s4173_s5 = int_to_ptr.vmem [resolvable:$false] %s4172_s5 }
  0x62   : > { %s4174_s0 = scalar_lea.vmem %s4173_s5, 2048  ;;  %p4175_p4 = scmp.lt.s32.totalorder %s4468_s27, %s4173_s5 }
  0x63   : > { %p4170_p2 = pnand %p4168_p1, %p4124_p3  ;;  %p4176_p8 = scmp.lt.s32.totalorder %s4174_s0, %s4167_s24 }
  0x65   : > { %p4171_p7 = pneg %p4170_p2  ;;  %p4177_p11 = por %p4176_p8, %p4175_p4 }
  0x67   : > { %p4178_p12 = pnand %p4177_p11, %p4171_p7 }
  0x69   : > { %4181 = shalt.err (!%p4178_p12)
}
  0x6a   : > { %4031 = dma.hbm_to_vmem [thread:$0]  (!%p4423_p13), %s4465_s7, 1024, %s4468_s27, %s4472_s23, %s5715_s28, %s5715_s28, %s5714_s9  }
  0x6b   : > { %p5716_p3 = scmp.ne.s32.totalorder %s5705_s22, 0 }
  0x6d   : > { %251 = sbr.rel (%p5716_p3) target bundleno = 625 (0x271), region = 32 }
  0x74   : > { %s4504_s26 = sand.u32 1, %s4257_s13   ;;  %p5717_p6 = scmp.ne.s32.totalorder %s5703_s20, 0 }
  0x75   : > { %s4009_s19 = smul.u32 192, %s4504_s26  ;;  %s254_s30 = scalar_lea.sflag [#allocation3], %s4504_s26 }
  0x77   : > { %s4510_s11 = scalar_lea.vmem [#allocation2], %s4009_s19 }
  0x78   : > { %4236 = dma.done.wait (%p5717_p6), %s254_s30, 3072  }
  0x79   : > { %4238 = vsyncadd (%p5717_p6), %s254_s30, 4294964224  ;;  %s262_s22 = sand.u32 1, %s4335_s18   ;;  %s2965_s9 = sshll.u32 %s4504_s26, 6 }
  0x7a   : > { %s263_s28 = scalar_lea.sflag [#allocation6], %s262_s22  ;;  %s4518_s7 = scalar_lea.vmem [#allocation5], %s2965_s9 }
  0x7b   : > { %4240 = dma.done.wait (%p5717_p6), %s263_s28, 1024  }
  0x7c   : > { %4242 = vsyncadd (%p5717_p6), %s263_s28, 4294966272  ;;  %p5718_p13 = scmp.eq.s32.totalorder %s4335_s18, 0 }
  0x7e   : > { %4244 = dma.done.wait (%p5718_p13), [#allocation6], 2048   ;;  %p5719_p0 = pmov %p5718_p13 }
  0x7f   : > { %v594_v0 = vld [vmem:[#allocation7] sm:$0xff]  ;;  %v4528_v1 = vld [vmem:[#allocation7 + $0x8] sm:$0xff]  ;;  %v4530_v2 = vld [vmem:[#allocation7 + $0x10] sm:$0xff]  ;;  %vm2265_vm0 = vcmask 1043456   ;;  %vm2387_vm1 = vcmask 1045504   ;;  %vm2681_vm2 = vcmask 1046528  }
  0x80   : > { %4246 = vsyncadd (%p5719_p0), [#allocation6], 4294965248  ;;  %v611_v3 = vand.u32 4294901760, %v594_v0  ;;  %v614_v4 = vand.u32 4294901760, %v4528_v1  ;;  %v4533_v5 = vld [vmem:[#allocation7 + $0x18] sm:$0xff]  ;;  %v617_v6 = vand.u32 4294901760, %v4530_v2 }
  0x81   : > { %v4536_v7 = vld [vmem:[#allocation7 + $0x20] sm:$0xff]  ;;  %v4538_v8 = vld [vmem:[#allocation7 + $0x28] sm:$0xff]  ;;  %v620_v9 = vand.u32 4294901760, %v4533_v5  ;;  %v4543_v12 = vld [vmem:[#allocation7 + $0x30] sm:$0xff]  ;;  %s5326_s18 = scalar_lea.vmem [#allocation8], %s4009_s19  ;;  %s4010_s20 = smul.u32 3072, %s4265_s15 }
  0x82   : > { %v5658_v10 = vand.u32 4294901760, %v4536_v7  ;;  %v5657_v11 = vand.u32 4294901760, %v4538_v8  ;;  %v4545_v13 = vld [vmem:[#allocation7 + $0x38] sm:$0xff]  ;;  %v4547_v14 = vld [vmem:[#allocation7 + $0x40] sm:$0xff]  ;;  %v4549_v15 = vpack.c.bf16 %v614_v4, %v611_v3  ;;  %v5653_v16 = vand.u32 4294901760, %v4543_v12  ;;  %v4553_v18 = vld [vmem:[#allocation7 + $0x48] sm:$0xff] }
  0x83   : > { %v5652_v17 = vand.u32 4294901760, %v4545_v13  ;;  %v5651_v19 = vand.u32 4294901760, %v4547_v14  ;;  %v4556_v20 = vld [vmem:[#allocation7 + $0x50] sm:$0xff]  ;;  %v4558_v21 = vld [vmem:[#allocation7 + $0x58] sm:$0xff]  ;;  %v4564_v22 = vpack.c.bf16 %v620_v9, %v617_v6  ;;  %v5650_v24 = vand.u32 4294901760, %v4553_v18  ;;  %v4574_v26 = vld [vmem:[#allocation7 + $0x60] sm:$0xff]  ;;  %s5580_s8 = scalar_lea.hbm %s5635_s3, %s4010_s20 }
  0x84   : > { %v4570_v23 = vpack.c.bf16 %v5657_v11, %v5658_v10  ;;  %v5649_v25 = vand.u32 4294901760, %v4556_v20  ;;  %v4576_v27 = vld [vmem:[#allocation7 + $0x68] sm:$0xff]  ;;  %v4578_v28 = vld [vmem:[#allocation7 + $0x70] sm:$0xff]  ;;  %3697 = vmatprep.subr.bf16.mxu1 %v4549_v15  ;;  %3793 = vmatprep.subr.bf16.mxu0 %v4549_v15  ;;  %v5648_v30 = vand.u32 4294901760, %v4558_v21  ;;  %v5647_v31 = vand.u32 4294901760, %v4574_v26  ;;  %v4591_v33 = vld [vmem:[#allocation7 + $0x78] sm:$0xff] }
  0x85   : > { %v4586_v29 = vpack.c.bf16 %v5652_v17, %v5653_v16  ;;  %v5646_v32 = vand.u32 4294901760, %v4576_v27  ;;  %v308_v34 = vld [vmem:[%s4510_s11] sm:$0xff]  ;;  %v2967_v35 = vld [vmem:[%s4510_s11 + $0x10] sm:$0xff]  ;;  %3699 = vmatpush3.bf16.msra.mxu1 %v4549_v15  ;;  %3795 = vmatpush3.bf16.msra.mxu0 %v4549_v15  ;;  %v4601_v36 = vpack.c.bf16 %v5650_v24, %v5651_v19  ;;  %v5645_v37 = vand.u32 4294901760, %v4578_v28  ;;  %v309_v47 = vld [vmem:[%s4510_s11 + $0x8] sm:$0xff]  ;;  %s2822_s27 = sshll.u32 %s5326_s18, 4  ;;  %s5582_s27 = int_to_ptr.vmem [resolvable:$true] %s2822_s27 }
  0x86   : > { %5720 = vst [vmem:[#allocation14_spill] sm:$0xff] %v4570_v23  ;;  %v5644_v38 = vand.u32 4294901760, %v4591_v33  ;;  %v4606_v39 = vld [vmem:[%s4510_s11 + $0x20] sm:$0xff]  ;;  %v4609_v40 = vld [vmem:[%s4510_s11 + $0x30] sm:$0xff]  ;;  %v4614_v42 = vsub.f32 %v594_v0, %v611_v3  ;;  %3701 = vmatprep.subr.bf16.mxu1 %v4564_v22  ;;  %3797 = vmatprep.subr.bf16.mxu0 %v4564_v22  ;;  %v4622_v43 = vpack.c.bf16 %v5648_v30, %v5649_v25  ;;  %v2968_v48 = vld [vmem:[%s4510_s11 + $0x18] sm:$0xff]  ;;  %s2804_s15 = scalar_lea.sflag [#allocation4], %s4504_s26 }
  0x87   : > { %5721 = vst [vmem:[#allocation15_spill] sm:$0xff] %v4586_v29  ;;  %5722 = vst [vmem:[#allocation16_spill] sm:$0xff] %v4601_v36  ;;  %v4612_v41 = vld [vmem:[%s4510_s11 + $0x40] sm:$0xff]  ;;  %v4628_v44 = vpack.c.bf16 %v5646_v32, %v5647_v31  ;;  %v522_v46 = vmul.f32 0.40261996, %v4606_v39  ;;  %v4635_v49 = vld [vmem:[%s4510_s11 + $0x28] sm:$0xff]  ;;  %v474_v51 = vadd.f32 %v4609_v40, %v2967_v35  ;;  %v4658_v60 = vsub.f32 %v4528_v1, %v614_v4 }
  0x88   : > { %5723 = vst [vmem:[#allocation17_spill] sm:$0xff] %v4622_v43  ;;  %v426_v45 = vadd.f32 %v4612_v41, %v308_v34  ;;  %v4641_v50 = vpack.c.bf16 %v5644_v38, %v5645_v37  ;;  %v4645_v52 = vld [vmem:[%s4510_s11 + $0x38] sm:$0xff]  ;;  %v4648_v53 = vld [vmem:[%s4510_s11 + $0x48] sm:$0xff]  ;;  %v523_v54 = vmul.f32 0.40261996, %v4635_v49  ;;  %v934_v55 = vand.u32 4294901760, %v4614_v42 }
  0x89   : > { %5724 = vst [vmem:[#allocation18_spill] sm:$0xff] %v4628_v44  ;;  %v4653_v56 = vld [vmem:[%s4510_s11 + $0x50] sm:$0xff]  ;;  %v427_v58 = vadd.f32 %v4648_v53, %v309_v47  ;;  %v475_v59 = vadd.f32 %v4645_v52, %v2968_v48  ;;  %v4661_v61 = vld [vmem:[%s4510_s11 + $0x58] sm:$0xff]  ;;  %3703 = vmatpush3.bf16.msra.mxu1 %v4564_v22  ;;  %3799 = vmatpush3.bf16.msra.mxu0 %v4564_v22  ;;  %v498_v62 = vmul.f32 0.24420135, %v474_v51  ;;  %s4183_s6 = scalar_lea.vmem %s5582_s27, 3072 }
  0x8a   : > { %5725 = vst [vmem:[#allocation19_spill] sm:$0xff] %v4641_v50  ;;  %v450_v57 = vmul.f32 0.054488685, %v426_v45  ;;  %v935_v63 = vsub.f32 %v4614_v42, %v934_v55  ;;  %v428_v0 = vadd.f32 %v4653_v56, %v2967_v35  ;;  %v476_v3 = vadd.f32 %v4612_v41, %v4606_v39  ;;  %3705 = vmatprep.subr.bf16.mxu1 %v4570_v23  ;;  %p4184_p5 = scmp.ne.s32.totalorder %s5582_s27, %s4183_s6  ;;  %s4281_s10 = smov [#allocation8]  }
  0x8b   : > { %3801 = vmatprep.subr.bf16.mxu0 %v4570_v23  ;;  %v451_v4 = vmul.f32 0.054488685, %v427_v58  ;;  %v499_v34 = vmul.f32 0.24420135, %v475_v59  ;;  %v941_v45 = vand.u32 4294901760, %v4658_v60  ;;  %v429_v51 = vadd.f32 %v4661_v61, %v2968_v48  ;;  %s4187_s24 = sshll.u32 %s4281_s10, 4  ;;  %s4188_s24 = int_to_ptr.vmem [resolvable:$false] %s4187_s24 }
  0x8c   : > { %v546_v1 = vadd.f32 %v522_v46, %v450_v57  ;;  %v936_v47 = vand.u32 4294901760, %v935_v63  ;;  %v452_v38 = vmul.f32 0.054488685, %v428_v0  ;;  %v500_v37 = vmul.f32 0.24420135, %v476_v3  ;;  %v4692_v63 = vld [vmem:[%s4510_s11 + $0x60] sm:$0xff]  ;;  %p4185_p9 = pnand %p4184_p5, %p4399_p10  ;;  %p4190_p2 = scmp.lt.s32.totalorder %s5582_s27, %s4188_s24 }
  0x8d   : > { %v547_v35 = vadd.f32 %v523_v54, %v451_v4  ;;  %v942_v31 = vsub.f32 %v4658_v60, %v941_v45  ;;  %v4674_v30 = vpack.c.bf16 %v941_v45, %v934_v55  ;;  %3707 = vmatpush3.bf16.msra.mxu1 %v4570_v23  ;;  %3803 = vmatpush3.bf16.msra.mxu0 %v4570_v23  ;;  %v524_v46 = vmul.f32 0.40261996, %v4609_v40  ;;  %s4189_s4 = scalar_lea.vmem %s4188_s24, 6144 }
  0x8e   : > { %v570_v32 = vadd.f32 %v546_v1, %v498_v62  ;;  %v453_v57 = vmul.f32 0.054488685, %v429_v51  ;;  %v477_v58 = vadd.f32 %v4648_v53, %v4635_v49  ;;  %v525_v59 = vmul.f32 0.40261996, %v4645_v52  ;;  %3709 = vmatprep.subr.bf16.mxu1 %v4586_v29  ;;  %3805 = vmatprep.subr.bf16.mxu0 %v4586_v29  ;;  %p4186_p1 = pneg %p4185_p9  ;;  %p4191_p7 = scmp.lt.s32.totalorder %s4189_s4, %s4183_s6 }
  0x8f   : > { %v571_v54 = vadd.f32 %v547_v35, %v499_v34  ;;  %v943_v55 = vand.u32 4294901760, %v942_v31  ;;  %v4689_v62 = vsub.f32 %v4530_v2, %v617_v6  ;;  %v548_v0 = vadd.f32 %v524_v46, %v452_v38 }
  0x90   : > { %v4684_v48 = vand.u32 4294901760, %v570_v32  ;;  %v501_v3 = vmul.f32 0.24420135, %v477_v58  ;;  %v549_v1 = vadd.f32 %v525_v59, %v453_v57  ;;  %v4697_v4 = vsub.f32 %v4533_v5, %v620_v9  ;;  %v4729_v58 = vld [vmem:[%s4510_s11 + $0x68] sm:$0xff]  ;;  %p4192_p4 = por %p4191_p7, %p4190_p2 }
  0x91   : > { %v4702_v34 = vand.u32 4294901760, %v571_v54  ;;  %v4704_v31 = vpack.c.bf16 %v943_v55, %v936_v47  ;;  %v948_v2 = vand.u32 4294901760, %v4689_v62  ;;  %3711 = vmatpush3.bf16.msra.mxu1 %v4586_v29  ;;  %3807 = vmatpush3.bf16.msra.mxu0 %v4586_v29  ;;  %v572_v6 = vadd.f32 %v548_v0, %v500_v37 }
  0x92   : > { %v4700_v45 = vsub.f32 %v570_v32, %v4684_v48  ;;  %v573_v38 = vadd.f32 %v549_v1, %v501_v3  ;;  %v955_v51 = vand.u32 4294901760, %v4697_v4  ;;  %v430_v5 = vadd.f32 %v4692_v63, %v4606_v39  ;;  %3713 = vmatprep.subr.bf16.mxu1 %v4601_v36  ;;  %3809 = vmatprep.subr.bf16.mxu0 %v4601_v36  ;;  %p4193_p8 = pnand %p4192_p4, %p4186_p1 }
  0x93   : > { %v4716_v32 = vsub.f32 %v571_v54, %v4702_v34  ;;  %v949_v47 = vsub.f32 %v4689_v62, %v948_v2  ;;  %v478_v37 = vadd.f32 %v4653_v56, %v4609_v40  ;;  %v4721_v35 = vand.u32 4294901760, %v572_v6 }
  0x94   : > { %5726 = vst [vmem:[#allocation20_spill] sm:$0xff] %v4700_v45  ;;  %v693_v9 = vand.u32 4294901760, %v4700_v45  ;;  %v4723_v46 = vand.u32 4294901760, %v573_v38  ;;  %v956_v39 = vsub.f32 %v4697_v4, %v955_v51  ;;  %v4726_v57 = vpack.c.bf16 %v955_v51, %v948_v2 }
  0x95   : > { %5727 = vst [vmem:[#allocation21_spill] sm:$0xff] %v4716_v32  ;;  %v5654_v54 = vand.u32 4294901760, %v4716_v32  ;;  %v950_v55 = vand.u32 4294901760, %v949_v47  ;;  %v454_v0 = vmul.f32 0.054488685, %v430_v5  ;;  %3715 = vmatpush3.bf16.msra.mxu1 %v4601_v36  ;;  %3811 = vmatpush3.bf16.msra.mxu0 %v4601_v36  ;;  %v4736_v3 = vsub.f32 %v572_v6, %v4721_v35  ;;  %v4838_v36 = vld [vmem:[%s4510_s11 + $0x88] sm:$0xff] }
  0x96   : > { %v694_v59 = vsub.f32 %v4700_v45, %v693_v9  ;;  %3524 = vmatprep.mubr.f32.mxu0 %v693_v9  ;;  %v4739_v1 = vsub.f32 %v573_v38, %v4723_v46  ;;  %v957_v2 = vand.u32 4294901760, %v956_v39  ;;  %v502_v51 = vmul.f32 0.24420135, %v478_v37  ;;  %3717 = vmatprep.subr.bf16.mxu1 %v4622_v43  ;;  %v4752_v38 = vld [vmem:[%s4510_s11 + $0x70] sm:$0xff] }
  0x97   : > { %5728 = vst [vmem:[#allocation22_spill] sm:$0xff] %v4736_v3  ;;  %3813 = vmatprep.subr.bf16.mxu0 %v4622_v43  ;;  %v4746_v5 = vsub.f32 %v4716_v32, %v5654_v54  ;;  %v526_v47 = vmul.f32 0.40261996, %v4612_v41  ;;  %v431_v6 = vadd.f32 %v4729_v58, %v4635_v49  ;;  %v5655_v37 = vand.u32 4294901760, %v4736_v3  ;;  %v4763_v54 = vld [vmem:[%s4510_s11 + $0x78] sm:$0xff] }
  0x98   : > { %5729 = vst [vmem:[#allocation23_spill] sm:$0xff] %v4739_v1  ;;  %v695_v9 = vand.u32 4294901760, %v694_v59  ;;  %v5656_v39 = vand.u32 4294901760, %v4739_v1  ;;  %v4756_v25 = vpack.c.bf16 %v957_v2, %v950_v55  ;;  %v479_v59 = vadd.f32 %v4661_v61, %v4645_v52 }
  0x99   : > { %v705_v24 = vand.u32 4294901760, %v4746_v5  ;;  %v550_v19 = vadd.f32 %v526_v47, %v454_v0  ;;  %v455_v17 = vmul.f32 0.054488685, %v431_v6  ;;  %v527_v16 = vmul.f32 0.40261996, %v4648_v53  ;;  %3719 = vmatpush3.bf16.msra.mxu1 %v4622_v43  ;;  %3815 = vmatpush3.bf16.msra.mxu0 %v4622_v43 }
  0x9a   : > { %3320 = vmatprep.mubr.f32.mxu1 %v695_v9  ;;  %v4770_v49 = vsub.f32 %v4736_v3, %v5655_v37  ;;  %v4775_v55 = vsub.f32 %v4739_v1, %v5656_v39  ;;  %v503_v0 = vmul.f32 0.24420135, %v479_v59  ;;  %v432_v2 = vadd.f32 %v4752_v38, %v4609_v40  ;;  %3721 = vmatprep.subr.bf16.mxu1 %v4628_v44 }
  0x9b   : > { %3817 = vmatprep.subr.bf16.mxu0 %v4628_v44  ;;  %v574_v9 = vadd.f32 %v550_v19, %v502_v51  ;;  %v551_v5 = vadd.f32 %v527_v16, %v455_v17  ;;  %v480_v47 = vadd.f32 %v4692_v63, %v4612_v41  ;;  %v528_v6 = vmul.f32 0.40261996, %v4653_v56  ;;  %v4793_v17 = vld [vmem:[%s4510_s11 + $0x80] sm:$0xff] }
  0x9c   : > { %v715_v37 = vand.u32 4294901760, %v4770_v49  ;;  %v456_v59 = vmul.f32 0.054488685, %v432_v2  ;;  %v433_v11 = vadd.f32 %v4763_v54, %v4645_v52  ;;  %v481_v16 = vadd.f32 %v4729_v58, %v4648_v53 }
  0x9d   : > { %v4788_v40 = vand.u32 4294901760, %v574_v9  ;;  %v575_v10 = vadd.f32 %v551_v5, %v503_v0  ;;  %v504_v45 = vmul.f32 0.24420135, %v480_v47  ;;  %3723 = vmatpush3.bf16.msra.mxu1 %v4628_v44  ;;  %3819 = vmatpush3.bf16.msra.mxu0 %v4628_v44  ;;  %v529_v49 = vmul.f32 0.40261996, %v4661_v61 }
  0x9e   : > { %v552_v19 = vadd.f32 %v528_v6, %v456_v59  ;;  %v457_v51 = vmul.f32 0.054488685, %v433_v11  ;;  %v5730_v2 = vand.u32 4294901760, %v4536_v7  ;;  %3725 = vmatprep.subr.bf16.mxu1 %v4641_v50  ;;  %3821 = vmatprep.subr.bf16.mxu0 %v4641_v50  ;;  %v505_v47 = vmul.f32 0.24420135, %v481_v16 }
  0x9f   : > { %v4806_v0 = vsub.f32 %v574_v9, %v4788_v40  ;;  %v4808_v5 = vand.u32 4294901760, %v575_v10  ;;  %v5733_v6 = vand.u32 4294901760, %v4538_v8  ;;  %v482_v43 = vadd.f32 %v4752_v38, %v4653_v56 }
  0xa0   : > { %v4801_v52 = vsub.f32 %v4536_v7, %v5730_v2  ;;  %v576_v59 = vadd.f32 %v552_v19, %v504_v45  ;;  %v553_v39 = vadd.f32 %v529_v49, %v457_v51  ;;  %v434_v2 = vadd.f32 %v4793_v17, %v4612_v41 }
  0xa1   : > { %5731 = vst [vmem:[#allocation24_spill] sm:$0xff] %v4806_v0  ;;  %5732 = vst [vmem:[#allocation25_spill] sm:$0xff] %v4808_v5  ;;  %v4813_v11 = vsub.f32 %v4538_v8, %v5733_v6  ;;  %v733_v44 = vand.u32 4294901760, %v4806_v0  ;;  %v4820_v9 = vsub.f32 %v575_v10, %v4808_v5  ;;  %3727 = vmatpush3.bf16.msra.mxu1 %v4641_v50  ;;  %3823 = vmatpush3.bf16.msra.mxu0 %v4641_v50 }
  0xa2   : > { %v962_v7 = vand.u32 4294901760, %v4801_v52  ;;  %v4827_v8 = vand.u32 4294901760, %v576_v59  ;;  %v577_v45 = vadd.f32 %v553_v39, %v505_v47  ;;  %v458_v19 = vmul.f32 0.054488685, %v434_v2  ;;  %3729 = vmatprep.subr.bf16.mxu1 %v4704_v31  ;;  %3825 = vmatprep.subr.bf16.mxu0 %v4674_v30 }
  0xa3   : > { %5734 = vst [vmem:[#allocation26_spill] sm:$0xff] %v4820_v9  ;;  %v969_v16 = vand.u32 4294901760, %v4813_v11  ;;  %v734_v10 = vsub.f32 %v4806_v0, %v733_v44  ;;  %v743_v51 = vand.u32 4294901760, %v4820_v9  ;;  %v506_v2 = vmul.f32 0.24420135, %v482_v43 }
  0xa4   : > { %v963_v41 = vsub.f32 %v4801_v52, %v962_v7  ;;  %v4841_v50 = vsub.f32 %v576_v59, %v4827_v8  ;;  %v4843_v39 = vand.u32 4294901760, %v577_v45  ;;  %3321 = vmatmul.mubr.f32.vlgmr.msra.gmra.mrb[0].mxu1 %v705_v24  ;;  %v5736_v29 = vand.u32 4294901760, %v4716_v32 }
  0xa5   : > { %v970_v49 = vsub.f32 %v4813_v11, %v969_v16  ;;  %v4835_v6 = vpack.c.bf16 %v969_v16, %v962_v7  ;;  %v735_v0 = vand.u32 4294901760, %v734_v10  ;;  %v744_v23 = vsub.f32 %v4820_v9, %v743_v51  ;;  %3731 = vmatpush3.bf16.msra.mxu1 %v4704_v31  ;;  %3323 = vmatprep.mubr.f32.mxu1 %v715_v37 }
  0xa6   : > { %5735 = vst [vmem:[#allocation27_spill] sm:$0xff] %v4841_v50  ;;  %v964_v47 = vand.u32 4294901760, %v963_v41  ;;  %3525 = vmatmul.mubr.f32.vlgmr.msra.gmra.mrb[0].mxu0 %v5736_v29  ;;  %v530_v7 = vmul.f32 0.40261996, %v4692_v63  ;;  %v753_v59 = vand.u32 4294901760, %v4841_v50  ;;  %v4853_v16 = vsub.f32 %v577_v45, %v4843_v39  ;;  %3733 = vmatprep.subr.bf16.mxu1 %v4756_v25 }
  0xa7   : > { %v971_v5 = vand.u32 4294901760, %v970_v49  ;;  %3827 = vmatpush3.bf16.msra.mxu0 %v4674_v30  ;;  %v435_v24 = vadd.f32 %v4838_v36, %v4648_v53  ;;  %v483_v29 = vadd.f32 %v4763_v54, %v4661_v61  ;;  %v5738_v43 = vand.u32 4294901760, %v4736_v3  ;;  %v4863_v49 = vld [vmem:[%s4510_s11 + $0x90] sm:$0xff] }
  0xa8   : > { %5737 = vst [vmem:[#allocation28_spill] sm:$0xff] %v4853_v16  ;;  %v745_v41 = vand.u32 4294901760, %v744_v23  ;;  %v554_v31 = vadd.f32 %v530_v7, %v458_v19  ;;  %v531_v30 = vmul.f32 0.40261996, %v4729_v58  ;;  %3829 = vmatprep.subr.bf16.mxu0 %v4726_v57  ;;  %v754_v53 = vsub.f32 %v4841_v50, %v753_v59 }
  0xa9   : > { %3527 = vmatprep.mubr.f32.mxu0 %v5738_v43  ;;  %v3736_v10 = vpack.c.bf16 %v971_v5, %v964_v47  ;;  %v763_v45 = vand.u32 4294901760, %v4853_v16  ;;  %v459_v37 = vmul.f32 0.054488685, %v435_v24  ;;  %v507_v9 = vmul.f32 0.24420135, %v483_v29  ;;  %v4885_v29 = vld [vmem:[%s4510_s11 + $0x98] sm:$0xff]  ;;  %3735 = vmatpush3.bf16.msra.mxu1 %v4756_v25 }
  0xaa   : > { %v5739_v43 = vand.u32 4294901760, %v4775_v55  ;;  %v5740_v23 = vand.u32 4294901760, %v4739_v1  ;;  %v578_v5 = vadd.f32 %v554_v31, %v506_v2  ;;  %v5741_v19 = vand.u32 4294901760, %v4543_v12 }
  0xab   : > { %v5742_v7 = vand.u32 4294901760, %v4545_v13  ;;  %v532_v24 = vmul.f32 0.40261996, %v4752_v38  ;;  %v755_v55 = vand.u32 4294901760, %v754_v53  ;;  %v764_v2 = vsub.f32 %v4853_v16, %v763_v45  ;;  %3831 = vmatpush3.bf16.msra.mxu0 %v4726_v57  ;;  %3737 = vmatprep.subr.bf16.mxu1 %v3736_v10 }
  0xac   : > { %3324 = vmatmul.mubr.f32.gmra.mrb[2].mxu1 %v5739_v43  ;;  %3528 = vmatmul.mubr.f32.gmra.mrb[2].mxu0 %v5740_v23  ;;  %v4876_v47 = vsub.f32 %v4543_v12, %v5741_v19  ;;  %v555_v31 = vadd.f32 %v531_v30, %v459_v37  ;;  %v436_v12 = vadd.f32 %v4863_v49, %v4653_v56  ;;  %v4892_v43 = vand.u32 4294901760, %v578_v5 }
  0xad   : > { %v4881_v50 = vsub.f32 %v4545_v13, %v5742_v7  ;;  %3326 = vmatprep.mubr.f32.mxu1 %v735_v0  ;;  %3530 = vmatprep.mubr.f32.mxu0 %v733_v44  ;;  %v484_v25 = vadd.f32 %v4793_v17, %v4692_v63  ;;  %v765_v0 = vand.u32 4294901760, %v764_v2  ;;  %v437_v44 = vadd.f32 %v4885_v29, %v4661_v61  ;;  %v4907_v7 = vld [vmem:[%s4510_s11 + $0xa0] sm:$0xff] }
  0xae   : > { %v976_v13 = vand.u32 4294901760, %v4876_v47  ;;  %3833 = vmatprep.subr.bf16.mxu0 %v4835_v6  ;;  %v579_v30 = vadd.f32 %v555_v31, %v507_v9  ;;  %v460_v53 = vmul.f32 0.054488685, %v436_v12  ;;  %v4902_v56 = vsub.f32 %v578_v5, %v4892_v43  ;;  %3739 = vmatpush3.bf16.msra.mxu1 %v3736_v10  ;;  %v4922_v10 = vld [vmem:[%s4510_s11 + $0xa8] sm:$0xff] }
  0xaf   : > { %v983_v23 = vand.u32 4294901760, %v4881_v50  ;;  %v508_v19 = vmul.f32 0.24420135, %v484_v25  ;;  %v461_v61 = vmul.f32 0.054488685, %v437_v44  ;;  %3835 = vmatpush3.bf16.msra.mxu0 %v4835_v6  ;;  %v485_v12 = vadd.f32 %v4838_v36, %v4729_v58 }
  0xb0   : > { %3327 = vmatmul.mubr.f32.gmra.mrb[4].mxu1 %v745_v41  ;;  %3531 = vmatmul.mubr.f32.gmra.mrb[4].mxu0 %v743_v51  ;;  %5743 = vst [vmem:[#allocation29_spill] sm:$0xff] %v4902_v56  ;;  %v977_v57 = vsub.f32 %v4876_v47, %v976_v13  ;;  %v4909_v9 = vand.u32 4294901760, %v579_v30  ;;  %v556_v31 = vadd.f32 %v532_v24, %v460_v53  ;;  %v773_v51 = vand.u32 4294901760, %v4902_v56 }
  0xb1   : > { %v984_v37 = vsub.f32 %v4881_v50, %v983_v23  ;;  %3329 = vmatprep.mubr.f32.mxu1 %v755_v55  ;;  %3533 = vmatprep.mubr.f32.mxu0 %v753_v59  ;;  %v3836_v2 = vpack.c.bf16 %v983_v23, %v976_v13  ;;  %v533_v55 = vmul.f32 0.40261996, %v4763_v54  ;;  %v438_v24 = vadd.f32 %v4907_v7, %v4692_v63 }
  0xb2   : > { %v978_v41 = vand.u32 4294901760, %v977_v57  ;;  %v4916_v25 = vsub.f32 %v579_v30, %v4909_v9  ;;  %v580_v59 = vadd.f32 %v556_v31, %v508_v19  ;;  %v774_v6 = vsub.f32 %v4902_v56, %v773_v51 }
  0xb3   : > { %v985_v5 = vand.u32 4294901760, %v984_v37  ;;  %3837 = vmatprep.subr.bf16.mxu0 %v3836_v2  ;;  %v509_v23 = vmul.f32 0.24420135, %v485_v12  ;;  %v486_v53 = vadd.f32 %v4863_v49, %v4752_v38  ;;  %v557_v57 = vadd.f32 %v533_v55, %v461_v61 }
  0xb4   : > { %5744 = vst [vmem:[#allocation30_spill] sm:$0xff] %v4916_v25  ;;  %3330 = vmatmul.mubr.f32.gmra.mrb[6].mxu1 %v765_v0  ;;  %3534 = vmatmul.mubr.f32.gmra.mrb[6].mxu0 %v763_v45  ;;  %v783_v30 = vand.u32 4294901760, %v4916_v25  ;;  %v4928_v44 = vand.u32 4294901760, %v580_v59  ;;  %v462_v37 = vmul.f32 0.054488685, %v438_v24  ;;  %v775_v19 = vand.u32 4294901760, %v774_v6 }
  0xb5   : > { %v3740_v13 = vpack.c.bf16 %v985_v5, %v978_v41  ;;  %3536 = vmatprep.mubr.f32.mxu0 %v773_v51  ;;  %3839 = vmatpush3.bf16.msra.mxu0 %v3836_v2  ;;  %v510_v63 = vmul.f32 0.24420135, %v486_v53  ;;  %v534_v45 = vmul.f32 0.40261996, %v4793_v17  ;;  %v439_v0 = vadd.f32 %v4922_v10, %v4729_v58  ;;  %v4946_v24 = vld [vmem:[%s4510_s11 + $0xb0] sm:$0xff] }
  0xb6   : > { %v784_v31 = vsub.f32 %v4916_v25, %v783_v30  ;;  %v4935_v51 = vsub.f32 %v580_v59, %v4928_v44  ;;  %v581_v41 = vadd.f32 %v557_v57, %v509_v23  ;;  %v487_v61 = vadd.f32 %v4885_v29, %v4763_v54  ;;  %3332 = vmatprep.mubr.f32.mxu1 %v775_v19 }
  0xb7   : > { %3741 = vmatprep.subr.bf16.mxu1 %v3740_v13  ;;  %v558_v5 = vadd.f32 %v534_v45, %v462_v37  ;;  %v463_v2 = vmul.f32 0.054488685, %v439_v0  ;;  %v535_v12 = vmul.f32 0.40261996, %v4838_v36  ;;  %v5746_v55 = vand.u32 4294901760, %v4547_v14 }
  0xb8   : > { %5745 = vst [vmem:[#allocation31_spill] sm:$0xff] %v4935_v51  ;;  %3743 = vmatpush3.bf16.msra.mxu1 %v3740_v13  ;;  %3537 = vmatmul.mubr.f32.gmra.mrb[8].mxu0 %v783_v30  ;;  %v785_v59 = vand.u32 4294901760, %v784_v31  ;;  %v793_v6 = vand.u32 4294901760, %v4935_v51  ;;  %v4949_v13 = vand.u32 4294901760, %v581_v41  ;;  %v511_v23 = vmul.f32 0.24420135, %v487_v61 }
  0xb9   : > { %v4943_v58 = vsub.f32 %v4547_v14, %v5746_v55  ;;  %v582_v53 = vadd.f32 %v558_v5, %v510_v63  ;;  %v559_v57 = vadd.f32 %v535_v12, %v463_v2  ;;  %v5747_v37 = vand.u32 4294901760, %v4553_v18 }
  0xba   : > { %3333 = vmatmul.mubr.f32.gmra.mrb[8].mxu1 %v785_v59  ;;  %v794_v14 = vsub.f32 %v4935_v51, %v793_v6  ;;  %3539 = vmatprep.mubr.f32.mxu0 %v793_v6  ;;  %v4959_v45 = vsub.f32 %v581_v41, %v4949_v13  ;;  %v440_v0 = vadd.f32 %v4946_v24, %v4752_v38  ;;  %v536_v63 = vmul.f32 0.40261996, %v4863_v49  ;;  %v4972_v59 = vld [vmem:[%s4510_s11 + $0xb8] sm:$0xff] }
  0xbb   : > { %v990_v30 = vand.u32 4294901760, %v4943_v58  ;;  %v4955_v19 = vsub.f32 %v4553_v18, %v5747_v37  ;;  %v4964_v31 = vand.u32 4294901760, %v582_v53  ;;  %v583_v61 = vadd.f32 %v559_v57, %v511_v23 }
  0xbc   : > { %5748 = vst [vmem:[#allocation32_spill] sm:$0xff] %v4959_v45  ;;  %v795_v2 = vand.u32 4294901760, %v794_v14  ;;  %v803_v12 = vand.u32 4294901760, %v4959_v45  ;;  %v464_v55 = vmul.f32 0.054488685, %v440_v0  ;;  %v488_v41 = vadd.f32 %v4907_v7, %v4793_v17 }
  0xbd   : > { %v991_v5 = vsub.f32 %v4943_v58, %v990_v30  ;;  %v997_v18 = vand.u32 4294901760, %v4955_v19  ;;  %v4975_v38 = vsub.f32 %v582_v53, %v4964_v31  ;;  %v4977_v6 = vand.u32 4294901760, %v583_v61 }
  0xbe   : > { %3335 = vmatprep.mubr.f32.mxu1 %v795_v2  ;;  %v804_v57 = vsub.f32 %v4959_v45, %v803_v12  ;;  %3540 = vmatmul.mubr.f32.gmra.mrb[10].mxu0 %v803_v12  ;;  %v512_v0 = vmul.f32 0.24420135, %v488_v41  ;;  %v560_v51 = vadd.f32 %v536_v63, %v464_v55  ;;  %v441_v16 = vadd.f32 %v4972_v59, %v4763_v54 }
  0xbf   : > { %5749 = vst [vmem:[#allocation33_spill] sm:$0xff] %v4975_v38  ;;  %v992_v37 = vand.u32 4294901760, %v991_v5  ;;  %v998_v23 = vsub.f32 %v4955_v19, %v997_v18  ;;  %v3840_v14 = vpack.c.bf16 %v997_v18, %v990_v30  ;;  %v813_v25 = vand.u32 4294901760, %v4975_v38  ;;  %v4991_v30 = vld [vmem:[%s4518_s7] sm:$0xff] }
  0xc0   : > { %v4983_v56 = vsub.f32 %v583_v61, %v4977_v6  ;;  %v805_v5 = vand.u32 4294901760, %v804_v57  ;;  %v584_v1 = vadd.f32 %v560_v51, %v512_v0  ;;  %v489_v2 = vadd.f32 %v4922_v10, %v4838_v36 }
  0xc1   : > { %v999_v53 = vand.u32 4294901760, %v998_v23  ;;  %3841 = vmatprep.subr.bf16.mxu0 %v3840_v14  ;;  %v537_v12 = vmul.f32 0.40261996, %v4885_v29  ;;  %v814_v63 = vsub.f32 %v4975_v38, %v813_v25  ;;  %3542 = vmatprep.mubr.f32.mxu0 %v813_v25  ;;  %v465_v55 = vmul.f32 0.054488685, %v441_v16 }
  0xc2   : > { %5750 = vst [vmem:[#allocation34_spill] sm:$0xff] %v4983_v56  ;;  %v823_v61 = vand.u32 4294901760, %v4983_v56  ;;  %3843 = vmatpush3.bf16.msra.mxu0 %v3840_v14  ;;  %3336 = vmatmul.mubr.f32.gmra.mrb[10].mxu1 %v805_v5  ;;  %v4995_v54 = vand.u32 4294901760, %v584_v1  ;;  %v513_v51 = vmul.f32 0.24420135, %v489_v2  ;;  %v5751_v41 = vand.u32 4294901760, %v4556_v20 }
  0xc3   : > { %v3744_v18 = vpack.c.bf16 %v999_v53, %v992_v37  ;;  %v5752_v57 = vand.u32 4294901760, %v4558_v21  ;;  %v815_v25 = vand.u32 4294901760, %v814_v63  ;;  %v561_v16 = vadd.f32 %v537_v12, %v465_v55  ;;  %v5018_v2 = vld [vmem:[%s4518_s7 + $0x8] sm:$0xff] }
  0xc4   : > { %v5000_v23 = vsub.f32 %v4556_v20, %v5751_v41  ;;  %v824_v37 = vsub.f32 %v4983_v56, %v823_v61  ;;  %3543 = vmatmul.mubr.f32.gmra.mrb[12].mxu0 %v823_v61  ;;  %v442_v14 = vadd.f32 %v4793_v17, %v4991_v30  ;;  %v5011_v53 = vsub.f32 %v584_v1, %v4995_v54 }
  0xc5   : > { %v5005_v0 = vsub.f32 %v4558_v21, %v5752_v57  ;;  %3745 = vmatprep.subr.bf16.mxu1 %v3744_v18  ;;  %v490_v21 = vadd.f32 %v4946_v24, %v4863_v49  ;;  %3338 = vmatprep.mubr.f32.mxu1 %v815_v25  ;;  %v585_v12 = vadd.f32 %v561_v16, %v513_v51  ;;  %v538_v17 = vmul.f32 0.40261996, %v4907_v7  ;;  %v5029_v51 = vld [vmem:[%s4518_s7 + $0x10] sm:$0xff] }
  0xc6   : > { %3747 = vmatpush3.bf16.msra.mxu1 %v3744_v18  ;;  %5753 = vst [vmem:[#allocation35_spill] sm:$0xff] %v5011_v53  ;;  %v1004_v20 = vand.u32 4294901760, %v5000_v23  ;;  %v825_v63 = vand.u32 4294901760, %v824_v37  ;;  %v466_v61 = vmul.f32 0.054488685, %v442_v14  ;;  %v833_v18 = vand.u32 4294901760, %v5011_v53 }
  0xc7   : > { %v1011_v5 = vand.u32 4294901760, %v5005_v0  ;;  %v5024_v57 = vand.u32 4294901760, %v585_v12  ;;  %v514_v56 = vmul.f32 0.24420135, %v490_v21  ;;  %v443_v25 = vadd.f32 %v4838_v36, %v5018_v2  ;;  %v5039_v36 = vld [vmem:[%s4518_s7 + $0x18] sm:$0xff] }
  0xc8   : > { %v1005_v1 = vsub.f32 %v5000_v23, %v1004_v20  ;;  %3339 = vmatmul.mubr.f32.gmra.mrb[12].mxu1 %v825_v63  ;;  %v562_v38 = vadd.f32 %v538_v17, %v466_v61  ;;  %v834_v37 = vsub.f32 %v5011_v53, %v833_v18  ;;  %3545 = vmatprep.mubr.f32.mxu0 %v833_v18  ;;  %v539_v61 = vmul.f32 0.40261996, %v4922_v10 }
  0xc9   : > { %v1012_v55 = vsub.f32 %v5005_v0, %v1011_v5  ;;  %v3844_v41 = vpack.c.bf16 %v1011_v5, %v1004_v20  ;;  %5754 = vst [vmem:[#allocation36_spill] sm:$0xff] %v5024_v57  ;;  %v491_v20 = vadd.f32 %v4972_v59, %v4885_v29  ;;  %v5035_v5 = vsub.f32 %v585_v12, %v5024_v57 }
  0xca   : > { %v1006_v16 = vand.u32 4294901760, %v1005_v1  ;;  %v586_v63 = vadd.f32 %v562_v38, %v514_v56  ;;  %v467_v21 = vmul.f32 0.054488685, %v443_v25  ;;  %v835_v17 = vand.u32 4294901760, %v834_v37 }
  0xcb   : > { %v1013_v14 = vand.u32 4294901760, %v1012_v55  ;;  %3845 = vmatprep.subr.bf16.mxu0 %v3844_v41  ;;  %5755 = vst [vmem:[#allocation37_spill] sm:$0xff] %v5035_v5  ;;  %v515_v53 = vmul.f32 0.24420135, %v491_v20  ;;  %v444_v18 = vadd.f32 %v4863_v49, %v5029_v51  ;;  %v843_v1 = vand.u32 4294901760, %v5035_v5 }
  0xcc   : > { %3847 = vmatpush3.bf16.msra.mxu0 %v3844_v41  ;;  %v5044_v55 = vand.u32 4294901760, %v586_v63  ;;  %v563_v12 = vadd.f32 %v539_v61, %v467_v21  ;;  %v492_v56 = vadd.f32 %v4907_v7, %v4991_v30  ;;  %3341 = vmatprep.mubr.f32.mxu1 %v835_v17  ;;  %v540_v41 = vmul.f32 0.40261996, %v4946_v24  ;;  %v5058_v21 = vld [vmem:[%s4518_s7 + $0x20] sm:$0xff] }
  0xcd   : > { %v3748_v45 = vpack.c.bf16 %v1013_v14, %v1006_v16  ;;  %v468_v38 = vmul.f32 0.054488685, %v444_v18  ;;  %v445_v25 = vadd.f32 %v4885_v29, %v5039_v36  ;;  %v493_v49 = vadd.f32 %v4922_v10, %v5018_v2  ;;  %3546 = vmatmul.mubr.f32.gmra.mrb[14].mxu0 %v843_v1 }
  0xce   : > { %5756 = vst [vmem:[#allocation38_spill] sm:$0xff] %v5044_v55  ;;  %v844_v37 = vsub.f32 %v5035_v5, %v843_v1  ;;  %v5055_v16 = vsub.f32 %v586_v63, %v5044_v55  ;;  %v587_v14 = vadd.f32 %v563_v12, %v515_v53  ;;  %v516_v20 = vmul.f32 0.24420135, %v492_v56 }
  0xcf   : > { %3749 = vmatprep.subr.bf16.mxu1 %v3748_v45  ;;  %v564_v61 = vadd.f32 %v540_v41, %v468_v38  ;;  %v469_v17 = vmul.f32 0.054488685, %v445_v25  ;;  %v517_v18 = vmul.f32 0.24420135, %v493_v49  ;;  %v541_v3 = vmul.f32 0.40261996, %v4972_v59 }
  0xd0   : > { %5757 = vst [vmem:[#allocation39_spill] sm:$0xff] %v5055_v16  ;;  %3751 = vmatpush3.bf16.msra.mxu1 %v3748_v45  ;;  %v845_v29 = vand.u32 4294901760, %v844_v37  ;;  %v853_v32 = vand.u32 4294901760, %v5055_v16  ;;  %v5062_v57 = vand.u32 4294901760, %v587_v14  ;;  %v5759_v1 = vand.u32 4294901760, %v4574_v26 }
  0xd1   : > { %v588_v45 = vadd.f32 %v564_v61, %v516_v20  ;;  %v565_v53 = vadd.f32 %v541_v3, %v469_v17  ;;  %v5760_v12 = vand.u32 4294901760, %v4576_v27  ;;  %v446_v38 = vadd.f32 %v4907_v7, %v5058_v21  ;;  %v423_v61 = vld [vmem:[%s4518_s7 + $0x28] sm:$0xff] }
  0xd2   : > { %5758 = vst [vmem:[#allocation40_spill] sm:$0xff] %v5062_v57  ;;  %v5067_v63 = vsub.f32 %v4574_v26, %v5759_v1  ;;  %3342 = vmatmul.mubr.f32.gmra.mrb[14].mxu1 %v845_v29  ;;  %v854_v41 = vsub.f32 %v5055_v16, %v853_v32  ;;  %3548 = vmatprep.mubr.f32.mxu0 %v853_v32  ;;  %v5764_v55 = vand.u32 4294901760, %v4578_v28 }
  0xd3   : > { %v5072_v56 = vsub.f32 %v4576_v27, %v5760_v12  ;;  %v5078_v25 = vsub.f32 %v587_v14, %v5062_v57  ;;  %v494_v3 = vadd.f32 %v4946_v24, %v5029_v51  ;;  %v5083_v49 = vand.u32 4294901760, %v588_v45 }
  0xd4   : > { %v1018_v26 = vand.u32 4294901760, %v5067_v63  ;;  %v589_v37 = vadd.f32 %v565_v53, %v517_v18  ;;  %v470_v20 = vmul.f32 0.054488685, %v446_v38  ;;  %v855_v7 = vand.u32 4294901760, %v854_v41 }
  0xd5   : > { %5761 = vst [vmem:[#allocation41_spill] sm:$0xff] %v5078_v25  ;;  %5762 = vst [vmem:[#allocation42_spill] sm:$0xff] %v5083_v49  ;;  %v1025_v27 = vand.u32 4294901760, %v5072_v56  ;;  %v863_v17 = vand.u32 4294901760, %v5078_v25  ;;  %v518_v29 = vmul.f32 0.24420135, %v494_v3  ;;  %v5090_v14 = vsub.f32 %v588_v45, %v5083_v49 }
  0xd6   : > { %v1019_v32 = vsub.f32 %v5067_v63, %v1018_v26  ;;  %v5092_v1 = vand.u32 4294901760, %v589_v37  ;;  %3344 = vmatprep.mubr.f32.mxu1 %v855_v7  ;;  %v542_v38 = vmul.f32 0.40261996, %v4991_v30  ;;  %v447_v41 = vadd.f32 %v4922_v10, %v423_v61 }
  0xd7   : > { %v1026_v12 = vsub.f32 %v5072_v56, %v1025_v27  ;;  %v3848_v16 = vpack.c.bf16 %v1025_v27, %v1018_v26  ;;  %v864_v18 = vsub.f32 %v5078_v25, %v863_v17  ;;  %3549 = vmatmul.mubr.f32.gmra.mrb[16].mxu0 %v863_v17  ;;  %v873_v3 = vand.u32 4294901760, %v5090_v14  ;;  %v424_v25 = vld [vmem:[%s4518_s7 + $0x30] sm:$0xff] }
  0xd8   : > { %5763 = vst [vmem:[#allocation43_spill] sm:$0xff] %v5092_v1  ;;  %v1020_v53 = vand.u32 4294901760, %v1019_v32  ;;  %v5100_v45 = vsub.f32 %v589_v37, %v5092_v1  ;;  %v495_v26 = vadd.f32 %v4972_v59, %v5039_v36  ;;  %v566_v7 = vadd.f32 %v542_v38, %v470_v20  ;;  %v425_v38 = vld [vmem:[%s4518_s7 + $0x38] sm:$0xff] }
  0xd9   : > { %v1027_v5 = vand.u32 4294901760, %v1026_v12  ;;  %3849 = vmatprep.subr.bf16.mxu0 %v3848_v16  ;;  %v865_v27 = vand.u32 4294901760, %v864_v18  ;;  %v471_v17 = vmul.f32 0.054488685, %v447_v41  ;;  %v543_v32 = vmul.f32 0.40261996, %v5018_v2  ;;  %3551 = vmatprep.mubr.f32.mxu0 %v873_v3 }
  0xda   : > { %3851 = vmatpush3.bf16.msra.mxu0 %v3848_v16  ;;  %v874_v10 = vsub.f32 %v5090_v14, %v873_v3  ;;  %v883_v49 = vand.u32 4294901760, %v5100_v45  ;;  %v519_v1 = vmul.f32 0.24420135, %v495_v26  ;;  %v590_v12 = vadd.f32 %v566_v7, %v518_v29 }
  0xdb   : > { %v3752_v37 = vpack.c.bf16 %v1027_v5, %v1020_v53  ;;  %3345 = vmatmul.mubr.f32.gmra.mrb[16].mxu1 %v865_v27  ;;  %v567_v57 = vadd.f32 %v543_v32, %v471_v17  ;;  %v5111_v18 = vsub.f32 %v4578_v28, %v5764_v55  ;;  %v5765_v16 = vand.u32 4294901760, %v4591_v33 }
  0xdc   : > { %v875_v41 = vand.u32 4294901760, %v874_v10  ;;  %v884_v3 = vsub.f32 %v5100_v45, %v883_v49  ;;  %3552 = vmatmul.mubr.f32.gmra.mrb[18].mxu0 %v883_v49  ;;  %v448_v5 = vadd.f32 %v4946_v24, %v424_v25  ;;  %v496_v29 = vadd.f32 %v5058_v21, %v4991_v30 }
  0xdd   : > { %v5116_v20 = vsub.f32 %v4591_v33, %v5765_v16  ;;  %3753 = vmatprep.subr.bf16.mxu1 %v3752_v37  ;;  %v5123_v53 = vand.u32 4294901760, %v590_v12  ;;  %v591_v28 = vadd.f32 %v567_v57, %v519_v1  ;;  %v1032_v55 = vand.u32 4294901760, %v5111_v18 }
  0xde   : > { %3755 = vmatpush3.bf16.msra.mxu1 %v3752_v37  ;;  %3347 = vmatprep.mubr.f32.mxu1 %v875_v41  ;;  %v885_v26 = vand.u32 4294901760, %v884_v3  ;;  %v472_v27 = vmul.f32 0.054488685, %v448_v5  ;;  %v520_v7 = vmul.f32 0.24420135, %v496_v29  ;;  %v449_v17 = vadd.f32 %v4972_v59, %v425_v38 }
  0xdf   : > { %v1039_v33 = vand.u32 4294901760, %v5116_v20  ;;  %v5129_v49 = vsub.f32 %v590_v12, %v5123_v53  ;;  %v5131_v24 = vand.u32 4294901760, %v591_v28  ;;  %v1033_v30 = vsub.f32 %v5111_v18, %v1032_v55 }
  0xe0   : > { %3348 = vmatmul.mubr.f32.gmra.mrb[18].mxu1 %v885_v26  ;;  %v544_v25 = vmul.f32 0.40261996, %v5029_v51  ;;  %v473_v1 = vmul.f32 0.054488685, %v449_v17  ;;  %v497_v32 = vadd.f32 %v423_v61, %v5018_v2  ;;  %v545_v41 = vmul.f32 0.40261996, %v5039_v36 }
  0xe1   : > { %v1040_v21 = vsub.f32 %v5116_v20, %v1039_v33  ;;  %v3852_v57 = vpack.c.bf16 %v1039_v33, %v1032_v55  ;;  %v893_v10 = vand.u32 4294901760, %v5129_v49  ;;  %v5139_v59 = vsub.f32 %v591_v28, %v5131_v24 }
  0xe2   : > { %v1034_v37 = vand.u32 4294901760, %v1033_v30  ;;  %v568_v16 = vadd.f32 %v544_v25, %v472_v27  ;;  %v521_v38 = vmul.f32 0.24420135, %v497_v32  ;;  %v3760_v2 = vpack.c.bf16 %v4658_v60, %v4614_v42  ;;  %v5771_v25 = vld [vmem:[#allocation18_spill] sm:$0xff]  ;;  %v5774_v32 = vld [vmem:[#allocation19_spill] sm:$0xff] }
  0xe3   : > { %v1041_v12 = vand.u32 4294901760, %v1040_v21  ;;  %3853 = vmatprep.subr.bf16.mxu0 %v3852_v57  ;;  %v894_v3 = vsub.f32 %v5129_v49, %v893_v10  ;;  %3554 = vmatprep.mubr.f32.mxu0 %v893_v10  ;;  %v903_v51 = vand.u32 4294901760, %v5139_v59  ;;  %v569_v29 = vadd.f32 %v545_v41, %v473_v1  ;;  %v5770_v21 = vld [vmem:[#allocation17_spill] sm:$0xff]  ;;  %v5775_v10 = vld [vmem:[#allocation40_spill] sm:$0xff]  ;;  %v5787_v41 = vld [vmem:[#allocation30_spill] sm:$0xff] }
  0xe4   : > { %3855 = vmatpush3.bf16.msra.mxu0 %v3852_v57  ;;  %v592_v61 = vadd.f32 %v568_v16, %v520_v7  ;;  %v3768_v28 = vpack.c.bf16 %v4813_v11, %v4801_v52  ;;  %v3772_v36 = vpack.c.bf16 %v4881_v50, %v4876_v47  ;;  %v3776_v26 = vpack.c.bf16 %v4955_v19, %v4943_v58  ;;  %v5780_v16 = vld [vmem:[#allocation22_spill] sm:$0xff] }
  0xe5   : > { %v3756_v5 = vpack.c.bf16 %v1041_v12, %v1034_v37  ;;  %3857 = vmatprep.subr.bf16.mxu0 %v4549_v15  ;;  %v895_v55 = vand.u32 4294901760, %v894_v3  ;;  %v904_v33 = vsub.f32 %v5139_v59, %v903_v51  ;;  %3555 = vmatmul.mubr.f32.gmra.mrb[20].mxu0 %v903_v51  ;;  %v5156_v42 = vpack.c.bf16 %v5005_v0, %v5000_v23  ;;  %v5778_v37 = vld [vmem:[#allocation20_spill] sm:$0xff]  ;;  %v5779_v12 = vld [vmem:[#allocation21_spill] sm:$0xff] }
  0xe6   : > { %v5158_v60 = vand.u32 4294901760, %v592_v61  ;;  %v593_v27 = vadd.f32 %v569_v29, %v521_v38  ;;  %v3764_v30 = vpack.c.bf16 %v4697_v4, %v4689_v62  ;;  %v5767_v62 = vld [vmem:[#allocation14_spill] sm:$0xff]  ;;  %v5769_v4 = vld [vmem:[#allocation16_spill] sm:$0xff]  ;;  %v3784_v57 = vpack.c.bf16 %v5072_v56, %v5067_v63  ;;  %v5781_v38 = vld [vmem:[#allocation23_spill] sm:$0xff] }
  0xe7   : > { %3757 = vmatprep.subr.bf16.mxu1 %v3756_v5  ;;  %3350 = vmatprep.mubr.f32.mxu1 %v895_v55  ;;  %v905_v52 = vand.u32 4294901760, %v904_v33  ;;  %v3788_v1 = vpack.c.bf16 %v5116_v20, %v5111_v18  ;;  %v5772_v63 = vld [vmem:[#allocation36_spill] sm:$0xff]  ;;  %v5773_v56 = vld [vmem:[#allocation38_spill] sm:$0xff]  ;;  %v5777_v20 = vld [vmem:[#allocation43_spill] sm:$0xff] }
  0xe8   : > { %3759 = vmatpush3.bf16.msra.mxu1 %v3756_v5  ;;  %v5161_v50 = vsub.f32 %v592_v61, %v5158_v60  ;;  %v5163_v11 = vand.u32 4294901760, %v593_v27  ;;  %v5776_v18 = vld [vmem:[#allocation42_spill] sm:$0xff] }
  0xe9   : > { %3761 = vmatprep.subr.bf16.mxu1 %v3760_v2  ;;  %3351 = vmatmul.mubr.f32.gmra.mrb[20].mxu1 %v905_v52 }
  0xea   : > { %v913_v47 = vand.u32 4294901760, %v5161_v50  ;;  %v5167_v58 = vsub.f32 %v593_v27, %v5163_v11 }
  0xec   : > { %v914_v19 = vsub.f32 %v5161_v50, %v913_v47  ;;  %3557 = vmatprep.mubr.f32.mxu0 %v913_v47  ;;  %v923_v23 = vand.u32 4294901760, %v5167_v58 }
  0xee   : > { %v915_v0 = vand.u32 4294901760, %v914_v19  ;;  %v924_v7 = vsub.f32 %v5167_v58, %v923_v23  ;;  %3558 = vmatmul.mubr.f32.gmra.mrb[22].mxu0 %v923_v23 }
  0xef   : > { %3592 = vmatprep.mubr.f32.mxu0 %v4684_v48 }
  0xf0   : > { %3353 = vmatprep.mubr.f32.mxu1 %v915_v0  ;;  %v925_v17 = vand.u32 4294901760, %v924_v7 }
  0xf2   : > { %3354 = vmatmul.mubr.f32.gmra.mrb[22].mxu1 %v925_v17  ;;  %3593 = vmatmul.mubr.f32.vlgmr.msra.gmra.mrb[0].mxu0 %v4702_v34 }
  0xf3   : > { %3388 = vmatprep.mubr.f32.mxu1 %v4684_v48  ;;  %3859 = vmatpush3.bf16.msra.mxu0 %v4549_v15  ;;  %v5766_v15 = vld [vmem:[#allocation25_spill] sm:$0xff] }
  0xf4   : > { %3595 = vmatprep.mubr.f32.mxu0 %v4721_v35  ;;  %3861 = vmatprep.subr.bf16.mxu0 %v4564_v22 }
  0xf6   : > { %3389 = vmatmul.mubr.f32.vlgmr.msra.gmra.mrb[0].mxu1 %v4702_v34  ;;  %3596 = vmatmul.mubr.f32.gmra.mrb[2].mxu0 %v4723_v46 }
  0xf7   : > { %3763 = vmatpush3.bf16.msra.mxu1 %v3760_v2  ;;  %3391 = vmatprep.mubr.f32.mxu1 %v4721_v35 }
  0xf8   : > { %3765 = vmatprep.subr.bf16.mxu1 %v3764_v30  ;;  %3598 = vmatprep.mubr.f32.mxu0 %v4788_v40 }
  0xf9   : > { %3863 = vmatpush3.bf16.msra.mxu0 %v4564_v22  ;;  %v5768_v22 = vld [vmem:[#allocation15_spill] sm:$0xff] }
  0xfa   : > { %3392 = vmatmul.mubr.f32.gmra.mrb[2].mxu1 %v4723_v46  ;;  %3599 = vmatmul.mubr.f32.gmra.mrb[4].mxu0 %v5766_v15 }
  0xfb   : > { %3394 = vmatprep.mubr.f32.mxu1 %v4788_v40  ;;  %3767 = vmatpush3.bf16.msra.mxu1 %v3764_v30 }
  0xfc   : > { %3601 = vmatprep.mubr.f32.mxu0 %v4827_v8  ;;  %3769 = vmatprep.subr.bf16.mxu1 %v3768_v28 }
  0xfd   : > { %3865 = vmatprep.subr.bf16.mxu0 %v5767_v62 }
  0xfe   : > { %3395 = vmatmul.mubr.f32.gmra.mrb[4].mxu1 %v5766_v15  ;;  %3602 = vmatmul.mubr.f32.gmra.mrb[6].mxu0 %v4843_v39 }
  0xff   : > { %3397 = vmatprep.mubr.f32.mxu1 %v4827_v8  ;;  %3771 = vmatpush3.bf16.msra.mxu1 %v3768_v28 }
 0x100   : > { %3867 = vmatpush3.bf16.msra.mxu0 %v5767_v62  ;;  %3604 = vmatprep.mubr.f32.mxu0 %v4892_v43 }
 0x101   : > { %3773 = vmatprep.subr.bf16.mxu1 %v3772_v36  ;;  %3869 = vmatprep.subr.bf16.mxu0 %v5768_v22 }
 0x102   : > { %3398 = vmatmul.mubr.f32.gmra.mrb[6].mxu1 %v4843_v39  ;;  %3605 = vmatmul.mubr.f32.gmra.mrb[8].mxu0 %v4909_v9 }
 0x103   : > { %3400 = vmatprep.mubr.f32.mxu1 %v4892_v43  ;;  %3775 = vmatpush3.bf16.msra.mxu1 %v3772_v36 }
 0x104   : > { %3607 = vmatprep.mubr.f32.mxu0 %v4928_v44  ;;  %3871 = vmatpush3.bf16.msra.mxu0 %v5768_v22 }
 0x105   : > { %3777 = vmatprep.subr.bf16.mxu1 %v3776_v26  ;;  %3873 = vmatprep.subr.bf16.mxu0 %v5769_v4 }
 0x106   : > { %3401 = vmatmul.mubr.f32.gmra.mrb[8].mxu1 %v4909_v9  ;;  %3608 = vmatmul.mubr.f32.gmra.mrb[10].mxu0 %v4949_v13 }
 0x107   : > { %3403 = vmatprep.mubr.f32.mxu1 %v4928_v44  ;;  %3610 = vmatprep.mubr.f32.mxu0 %v4964_v31 }
 0x108   : > { %3779 = vmatpush3.bf16.msra.mxu1 %v3776_v26  ;;  %3875 = vmatpush3.bf16.msra.mxu0 %v5769_v4 }
 0x109   : > { %3781 = vmatprep.subr.bf16.mxu1 %v5156_v42  ;;  %3877 = vmatprep.subr.bf16.mxu0 %v5770_v21 }
 0x10a   : > { %3404 = vmatmul.mubr.f32.gmra.mrb[10].mxu1 %v4949_v13  ;;  %3611 = vmatmul.mubr.f32.gmra.mrb[12].mxu0 %v4977_v6 }
 0x10b   : > { %3406 = vmatprep.mubr.f32.mxu1 %v4964_v31  ;;  %3613 = vmatprep.mubr.f32.mxu0 %v4995_v54 }
 0x10c   : > { %3783 = vmatpush3.bf16.msra.mxu1 %v5156_v42  ;;  %3879 = vmatpush3.bf16.msra.mxu0 %v5770_v21 }
 0x10d   : > { %3785 = vmatprep.subr.bf16.mxu1 %v3784_v57  ;;  %3881 = vmatprep.subr.bf16.mxu0 %v5771_v25 }
 0x10e   : > { %3407 = vmatmul.mubr.f32.gmra.mrb[12].mxu1 %v4977_v6  ;;  %3614 = vmatmul.mubr.f32.gmra.mrb[14].mxu0 %v5772_v63 }
 0x10f   : > { %3409 = vmatprep.mubr.f32.mxu1 %v4995_v54  ;;  %3616 = vmatprep.mubr.f32.mxu0 %v5773_v56 }
 0x110   : > { %3787 = vmatpush3.bf16.msra.mxu1 %v3784_v57  ;;  %3883 = vmatpush3.bf16.msra.mxu0 %v5771_v25 }
 0x111   : > { %3789 = vmatprep.subr.bf16.mxu1 %v3788_v1  ;;  %3885 = vmatprep.subr.bf16.mxu0 %v5774_v32 }
 0x112   : > { %3410 = vmatmul.mubr.f32.gmra.mrb[14].mxu1 %v5772_v63  ;;  %3617 = vmatmul.mubr.f32.gmra.mrb[16].mxu0 %v5775_v10 }
 0x113   : > { %3412 = vmatprep.mubr.f32.mxu1 %v5773_v56  ;;  %3619 = vmatprep.mubr.f32.mxu0 %v5776_v18 }
 0x114   : > { %3791 = vmatpush3.bf16.msra.mxu1 %v3788_v1  ;;  %3887 = vmatpush3.bf16.msra.mxu0 %v5774_v32 }
 0x116   : > { %3413 = vmatmul.mubr.f32.gmra.mrb[16].mxu1 %v5775_v10  ;;  %3620 = vmatmul.mubr.f32.gmra.mrb[18].mxu0 %v5777_v20 }
 0x117   : > { %3415 = vmatprep.mubr.f32.mxu1 %v5776_v18  ;;  %3622 = vmatprep.mubr.f32.mxu0 %v5123_v53 }
 0x11a   : > { %3416 = vmatmul.mubr.f32.gmra.mrb[18].mxu1 %v5777_v20  ;;  %3623 = vmatmul.mubr.f32.gmra.mrb[20].mxu0 %v5131_v24 }
 0x11b   : > { %3418 = vmatprep.mubr.f32.mxu1 %v5123_v53  ;;  %3625 = vmatprep.mubr.f32.mxu0 %v5158_v60 }
 0x11e   : > { %3419 = vmatmul.mubr.f32.gmra.mrb[20].mxu1 %v5131_v24  ;;  %3626 = vmatmul.mubr.f32.gmra.mrb[22].mxu0 %v5163_v11 }
 0x11f   : > { %3421 = vmatprep.mubr.f32.mxu1 %v5158_v60  ;;  %3660 = vmatprep.mubr.f32.mxu0 %v4684_v48  ;;  %v5782_v48 = vld [vmem:[#allocation24_spill] sm:$0xff] }
 0x122   : > { %3422 = vmatmul.mubr.f32.gmra.mrb[22].mxu1 %v5163_v11  ;;  %3661 = vmatmul.mubr.f32.vlgmr.msra.gmra.mrb[0].mxu0 %v4702_v34  ;;  %v5783_v34 = vld [vmem:[#allocation26_spill] sm:$0xff] }
 0x123   : > { %3456 = vmatprep.mubr.f32.mxu1 %v5778_v37  ;;  %3663 = vmatprep.mubr.f32.mxu0 %v4721_v35  ;;  %v5784_v35 = vld [vmem:[#allocation27_spill] sm:$0xff] }
 0x126   : > { %3457 = vmatmul.mubr.f32.vlgmr.msra.gmra.mrb[0].mxu1 %v5779_v12  ;;  %3664 = vmatmul.mubr.f32.gmra.mrb[2].mxu0 %v4723_v46  ;;  %v5785_v46 = vld [vmem:[#allocation28_spill] sm:$0xff] }
 0x127   : > { %3459 = vmatprep.mubr.f32.mxu1 %v5780_v16  ;;  %3666 = vmatprep.mubr.f32.mxu0 %v4788_v40  ;;  %v5786_v40 = vld [vmem:[#allocation29_spill] sm:$0xff] }
 0x12a   : > { %3460 = vmatmul.mubr.f32.gmra.mrb[2].mxu1 %v5781_v38  ;;  %3667 = vmatmul.mubr.f32.gmra.mrb[4].mxu0 %v5766_v15 }
 0x12b   : > { %3462 = vmatprep.mubr.f32.mxu1 %v5782_v48  ;;  %3669 = vmatprep.mubr.f32.mxu0 %v4827_v8  ;;  %v5788_v8 = vld [vmem:[#allocation31_spill] sm:$0xff] }
 0x12e   : > { %3463 = vmatmul.mubr.f32.gmra.mrb[4].mxu1 %v5783_v34  ;;  %3670 = vmatmul.mubr.f32.gmra.mrb[6].mxu0 %v4843_v39  ;;  %v5789_v39 = vld [vmem:[#allocation32_spill] sm:$0xff] }
 0x12f   : > { %3465 = vmatprep.mubr.f32.mxu1 %v5784_v35  ;;  %3672 = vmatprep.mubr.f32.mxu0 %v4892_v43  ;;  %v5790_v43 = vld [vmem:[#allocation33_spill] sm:$0xff] }
 0x132   : > { %3466 = vmatmul.mubr.f32.gmra.mrb[6].mxu1 %v5785_v46  ;;  %3673 = vmatmul.mubr.f32.gmra.mrb[8].mxu0 %v4909_v9  ;;  %v5791_v9 = vld [vmem:[#allocation34_spill] sm:$0xff] }
 0x133   : > { %3468 = vmatprep.mubr.f32.mxu1 %v5786_v40  ;;  %3675 = vmatprep.mubr.f32.mxu0 %v4928_v44  ;;  %v5792_v44 = vld [vmem:[#allocation35_spill] sm:$0xff] }
 0x136   : > { %3469 = vmatmul.mubr.f32.gmra.mrb[8].mxu1 %v5787_v41  ;;  %3676 = vmatmul.mubr.f32.gmra.mrb[10].mxu0 %v4949_v13  ;;  %v5793_v13 = vld [vmem:[#allocation37_spill] sm:$0xff] }
 0x137   : > { %3471 = vmatprep.mubr.f32.mxu1 %v5788_v8  ;;  %3678 = vmatprep.mubr.f32.mxu0 %v4964_v31  ;;  %v5794_v31 = vld [vmem:[#allocation39_spill] sm:$0xff] }
 0x13a   : > { %3472 = vmatmul.mubr.f32.gmra.mrb[10].mxu1 %v5789_v39  ;;  %3679 = vmatmul.mubr.f32.gmra.mrb[12].mxu0 %v4977_v6  ;;  %v5795_v6 = vld [vmem:[#allocation41_spill] sm:$0xff] }
 0x13b   : > { %3474 = vmatprep.mubr.f32.mxu1 %v5790_v43  ;;  %3681 = vmatprep.mubr.f32.mxu0 %v4995_v54 }
 0x13e   : > { %3475 = vmatmul.mubr.f32.gmra.mrb[12].mxu1 %v5791_v9  ;;  %3682 = vmatmul.mubr.f32.gmra.mrb[14].mxu0 %v5772_v63 }
 0x13f   : > { %3477 = vmatprep.mubr.f32.mxu1 %v5792_v44  ;;  %3684 = vmatprep.mubr.f32.mxu0 %v5773_v56 }
 0x142   : > { %3478 = vmatmul.mubr.f32.gmra.mrb[14].mxu1 %v5793_v13  ;;  %3685 = vmatmul.mubr.f32.gmra.mrb[16].mxu0 %v5775_v10 }
 0x143   : > { %3480 = vmatprep.mubr.f32.mxu1 %v5794_v31  ;;  %3687 = vmatprep.mubr.f32.mxu0 %v5776_v18 }
 0x146   : > { %3481 = vmatmul.mubr.f32.gmra.mrb[16].mxu1 %v5795_v6  ;;  %3688 = vmatmul.mubr.f32.gmra.mrb[18].mxu0 %v5777_v20 }
 0x147   : > { %3483 = vmatprep.mubr.f32.mxu1 %v5090_v14  ;;  %3690 = vmatprep.mubr.f32.mxu0 %v5123_v53  ;;  %v4280_v14 = vmov 0.0  }
 0x148   : > { %v5291_v3 = vrot.slane %v4280_v14, 2  ;;  %v5294_v5 = vrot.slane %v4280_v14, 4 }
 0x14a   : > { %3484 = vmatmul.mubr.f32.gmra.mrb[18].mxu1 %v5100_v45  ;;  %3691 = vmatmul.mubr.f32.gmra.mrb[20].mxu0 %v5131_v24  ;;  %v2489_v45 = vmul.f32 0.24420135, %v5291_v3 }
 0x14b   : > { %3486 = vmatprep.mubr.f32.mxu1 %v5129_v49  ;;  %3693 = vmatprep.mubr.f32.mxu0 %v5158_v60 }
 0x14c   : > { %v5296_v55 = vrot.slane %v2489_v45, 1 }
 0x14e   : > { %3487 = vmatmul.mubr.f32.gmra.mrb[20].mxu1 %v5139_v59  ;;  %3694 = vmatmul.mubr.f32.gmra.mrb[22].mxu0 %v5163_v11 }
 0x14f   : > { %3489 = vmatprep.mubr.f32.mxu1 %v5161_v50 }
 0x152   : > { %3490 = vmatmul.mubr.f32.gmra.mrb[22].mxu1 %v5167_v58 }
 0x1f5   : > { %v3662_v54 = vpop.f32.mrb[0].mxu0 }
 0x1f6   : > { %v2098_v53 = vpop.f32.mrb[1].mxu0 }
 0x1f9   : > { %v3458_v24 = vpop.f32.mrb[0].mxu1  ;;  %v3665_v51 = vpop.f32.mrb[2].mxu0 }
 0x1fa   : > { %v3888_v49 = vadd.f32 %v3662_v54, %v3458_v24  ;;  %v1320_v2 = vpop.f32.mrb[1].mxu1  ;;  %v2110_v59 = vpop.f32.mrb[3].mxu0 }
 0x1fb   : > { %v3889_v61 = vadd.f32 %v2098_v53, %v1320_v2 }
 0x1fc   : > { %v2267_v29 = vrot.slane %v3888_v49, 4  ;;  %v2389_v28 = vrot.slane %v3888_v49, 2  ;;  %v2513_v36 = vmul.f32 0.40261996, %v3888_v49 }
 0x1fd   : > { %v2266_v33 = vrot.slane %v3889_v61, 4  ;;  %v2388_v26 = vrot.slane %v3889_v61, 2  ;;  %v2512_v42 = vmul.f32 0.40261996, %v3889_v61  ;;  %v3461_v60 = vpop.f32.mrb[2].mxu1  ;;  %v3668_v27 = vpop.f32.mrb[4].mxu0 }
 0x1fe   : > { %v2270_v52 = vsel %vm2265_vm0, %v2267_v29, %v5294_v5  ;;  %v2392_v50 = vsel %vm2387_vm1, %v2389_v28, %v5291_v3  ;;  %v2561_v11 = vrot.slane %v2513_v36, 2  ;;  %v3890_v47 = vadd.f32 %v3665_v51, %v3461_v60  ;;  %v1334_v58 = vpop.f32.mrb[3].mxu1  ;;  %v5302_v19 = vpop.f32.mrb[5].mxu0 }
 0x1ff   : > { %v2340_v23 = vadd.f32 %v3888_v49, %v2270_v52  ;;  %v2463_v0 = vadd.f32 %v3888_v49, %v2392_v50  ;;  %v2268_v7 = vsel %vm2265_vm0, %v2266_v33, %v2267_v29  ;;  %v2390_v17 = vsel %vm2387_vm1, %v2388_v26, %v2389_v28 }
 0x200   : > { %v2563_v30 = vsel %vm2387_vm1, %v2561_v11, %v5291_v3  ;;  %v2339_v15 = vadd.f32 %v3889_v61, %v2268_v7  ;;  %v2462_v62 = vadd.f32 %v3889_v61, %v2390_v17  ;;  %v2560_v22 = vrot.slane %v2512_v42, 2 }
 0x201   : > { %v2364_v4 = vmul.f32 0.054488685, %v2340_v23  ;;  %v2488_v21 = vmul.f32 0.24420135, %v2463_v0  ;;  %v2272_v57 = vrot.slane %v3890_v47, 4  ;;  %v2394_v25 = vrot.slane %v3890_v47, 2 }
 0x202   : > { %v2363_v1 = vmul.f32 0.054488685, %v2339_v15  ;;  %v2487_v63 = vmul.f32 0.24420135, %v2462_v62  ;;  %v2562_v56 = vsel %vm2387_vm1, %v2560_v22, %v2561_v11  ;;  %v2515_v32 = vmul.f32 0.40261996, %v3890_v47 }
 0x203   : > { %v2633_v10 = vadd.f32 %v2563_v30, %v2364_v4  ;;  %v2683_v18 = vrot.slane %v2488_v21, 1  ;;  %v2274_v20 = vsel %vm2265_vm0, %v2272_v57, %v5294_v5  ;;  %v2396_v37 = vsel %vm2387_vm1, %v2394_v25, %v5291_v3  ;;  %v3464_v12 = vpop.f32.mrb[4].mxu1  ;;  %v3671_v16 = vpop.f32.mrb[6].mxu0 }
 0x204   : > { %v2632_v38 = vadd.f32 %v2562_v56, %v2363_v1  ;;  %v2682_v48 = vrot.slane %v2487_v63, 1  ;;  %v2342_v34 = vadd.f32 %v3890_v47, %v2274_v20  ;;  %v2466_v35 = vadd.f32 %v3890_v47, %v2396_v37  ;;  %v1348_v46 = vpop.f32.mrb[5].mxu1  ;;  %v2134_v40 = vpop.f32.mrb[7].mxu0 }
 0x205   : > { %v2686_v41 = vsel %vm2681_vm2, %v2683_v18, %v5296_v55  ;;  %v2565_v8 = vrot.slane %v2515_v32, 2  ;;  %v3891_v39 = vadd.f32 %v2110_v59, %v1334_v58  ;;  %v5315_v43 = vadd.f32 %v3668_v27, %v3464_v12  ;;  %v3467_v9 = vpop.f32.mrb[6].mxu1  ;;  %v5317_v44 = vpop.f32.mrb[8].mxu0 }
 0x206   : > { %v2756_v13 = vadd.f32 %v2686_v41, %v2633_v10  ;;  %v2684_v31 = vsel %vm2681_vm2, %v2682_v48, %v2683_v18  ;;  %v2366_v6 = vmul.f32 0.054488685, %v2342_v34  ;;  %v2491_v54 = vmul.f32 0.24420135, %v2466_v35  ;;  %v1362_v14 = vpop.f32.mrb[7].mxu1  ;;  %v5320_v53 = vpop.f32.mrb[9].mxu0 }
 0x207   : > { %v2755_v45 = vadd.f32 %v2684_v31, %v2632_v38  ;;  %v2567_v24 = vsel %vm2387_vm1, %v2565_v8, %v5291_v3  ;;  %v2271_v51 = vrot.slane %v3891_v39, 4  ;;  %v2393_v49 = vrot.slane %v3891_v39, 2 }
 0x208   : > { %2780 = vst [vmem:[%s5326_s18 + $0x8] sm:$0xff] %v2756_v13  ;;  %v2635_v2 = vadd.f32 %v2567_v24, %v2366_v6  ;;  %v2688_v59 = vrot.slane %v2491_v54, 1  ;;  %v2514_v61 = vmul.f32 0.40261996, %v3891_v39  ;;  %v2276_v29 = vrot.slane %v5315_v43, 4 }
 0x209   : > { %2779 = vst [vmem:[%s5326_s18] sm:$0xff] %v2755_v45  ;;  %v2273_v28 = vsel %vm2265_vm0, %v2271_v51, %v2272_v57  ;;  %v2395_v36 = vsel %vm2387_vm1, %v2393_v49, %v2394_v25  ;;  %v2398_v33 = vrot.slane %v5315_v43, 2  ;;  %v2517_v26 = vmul.f32 0.40261996, %v5315_v43  ;;  %v5335_v42 = vpop.f32.mrb[8].mxu1  ;;  %v5337_v60 = vpop.f32.mrb[10].mxu0 }
 0x20a   : > { %v2690_v27 = vsel %vm2681_vm2, %v2688_v59, %v5296_v55  ;;  %v2341_v52 = vadd.f32 %v3891_v39, %v2273_v28  ;;  %v2465_v50 = vadd.f32 %v3891_v39, %v2395_v36  ;;  %v2564_v11 = vrot.slane %v2514_v61, 2  ;;  %v5341_v47 = vpop.f32.mrb[9].mxu1  ;;  %v5343_v58 = vpop.f32.mrb[11].mxu0 }
 0x20b   : > { %v2758_v23 = vadd.f32 %v2690_v27, %v2635_v2  ;;  %v2278_v0 = vsel %vm2265_vm0, %v2276_v29, %v5294_v5  ;;  %v2400_v7 = vsel %vm2387_vm1, %v2398_v33, %v5291_v3  ;;  %v2569_v17 = vrot.slane %v2517_v26, 2 }
 0x20c   : > { %v2365_v30 = vmul.f32 0.054488685, %v2341_v52  ;;  %v2490_v15 = vmul.f32 0.24420135, %v2465_v50  ;;  %v2566_v62 = vsel %vm2387_vm1, %v2564_v11, %v2565_v8  ;;  %v2344_v22 = vadd.f32 %v5315_v43, %v2278_v0 }
 0x20d   : > { %2782 = vst [vmem:[%s5326_s18 + $0x18] sm:$0xff] %v2758_v23  ;;  %v2468_v4 = vadd.f32 %v5315_v43, %v2400_v7  ;;  %v2571_v21 = vsel %vm2387_vm1, %v2569_v17, %v5291_v3  ;;  %v3893_v57 = vadd.f32 %v5302_v19, %v1348_v46  ;;  %v3894_v25 = vadd.f32 %v3671_v16, %v3467_v9  ;;  %v5356_v1 = vpop.f32.mrb[10].mxu1  ;;  %v5358_v63 = vpop.f32.mrb[12].mxu0 }
 0x20e   : > { %v2634_v56 = vadd.f32 %v2566_v62, %v2365_v30  ;;  %v2687_v32 = vrot.slane %v2490_v15, 1  ;;  %v2368_v10 = vmul.f32 0.054488685, %v2344_v22  ;;  %v3895_v18 = vadd.f32 %v2134_v40, %v1362_v14  ;;  %v5360_v20 = vpop.f32.mrb[11].mxu1  ;;  %v5362_v37 = vpop.f32.mrb[13].mxu0 }
 0x20f   : > { %v2493_v12 = vmul.f32 0.24420135, %v2468_v4  ;;  %v2275_v38 = vrot.slane %v3893_v57, 4  ;;  %v2397_v48 = vrot.slane %v3893_v57, 2  ;;  %v2516_v34 = vmul.f32 0.40261996, %v3893_v57 }
 0x210   : > { %v2689_v35 = vsel %vm2681_vm2, %v2687_v32, %v2688_v59  ;;  %v2637_v19 = vadd.f32 %v2571_v21, %v2368_v10  ;;  %v2280_v16 = vrot.slane %v3894_v25, 4  ;;  %v2402_v46 = vrot.slane %v3894_v25, 2 }
 0x211   : > { %v2757_v41 = vadd.f32 %v2689_v35, %v2634_v56  ;;  %v2692_v8 = vrot.slane %v2493_v12, 1  ;;  %v2277_v39 = vsel %vm2265_vm0, %v2275_v38, %v2276_v29  ;;  %v2399_v40 = vsel %vm2387_vm1, %v2397_v48, %v2398_v33  ;;  %v5367_v43 = vpop.f32.mrb[12].mxu1  ;;  %v5369_v9 = vpop.f32.mrb[14].mxu0 }
 0x212   : > { %v2343_v13 = vadd.f32 %v3893_v57, %v2277_v39  ;;  %v2467_v31 = vadd.f32 %v3893_v57, %v2399_v40  ;;  %v2568_v6 = vrot.slane %v2516_v34, 2  ;;  %v2282_v54 = vsel %vm2265_vm0, %v2280_v16, %v5294_v5  ;;  %v5373_v14 = vpop.f32.mrb[13].mxu1  ;;  %v5375_v45 = vpop.f32.mrb[15].mxu0 }
 0x213   : > { %2781 = vst [vmem:[%s5326_s18 + $0x10] sm:$0xff] %v2757_v41  ;;  %v2694_v24 = vsel %vm2681_vm2, %v2692_v8, %v5296_v55  ;;  %v2346_v51 = vadd.f32 %v3894_v25, %v2282_v54  ;;  %v2404_v49 = vsel %vm2387_vm1, %v2402_v46, %v5291_v3  ;;  %v2519_v2 = vmul.f32 0.40261996, %v3894_v25 }
 0x214   : > { %v2760_v59 = vadd.f32 %v2694_v24, %v2637_v19  ;;  %v2367_v61 = vmul.f32 0.054488685, %v2343_v13  ;;  %v2492_v29 = vmul.f32 0.24420135, %v2467_v31  ;;  %v2570_v28 = vsel %vm2387_vm1, %v2568_v6, %v2569_v17 }
 0x215   : > { %v2370_v36 = vmul.f32 0.054488685, %v2346_v51  ;;  %v2470_v33 = vadd.f32 %v3894_v25, %v2404_v49  ;;  %v2573_v26 = vrot.slane %v2519_v2, 2  ;;  %v2279_v27 = vrot.slane %v3895_v18, 4  ;;  %v5383_v52 = vpop.f32.mrb[14].mxu1  ;;  %v5385_v50 = vpop.f32.mrb[16].mxu0 }
 0x216   : > { %2784 = vst [vmem:[%s5326_s18 + $0x28] sm:$0xff] %v2760_v59  ;;  %v2636_v11 = vadd.f32 %v2570_v28, %v2367_v61  ;;  %v2691_v23 = vrot.slane %v2492_v29, 1  ;;  %v2401_v0 = vrot.slane %v3895_v18, 2  ;;  %v2518_v7 = vmul.f32 0.40261996, %v3895_v18  ;;  %v5388_v30 = vpop.f32.mrb[15].mxu1 }
 0x217   : > { %v5390_v15 = vpop.f32.mrb[17].mxu0  ;;  %v2495_v62 = vmul.f32 0.24420135, %v2470_v33  ;;  %v2575_v17 = vsel %vm2387_vm1, %v2573_v26, %v5291_v3  ;;  %v2281_v22 = vsel %vm2265_vm0, %v2279_v27, %v2280_v16  ;;  %v3896_v4 = vadd.f32 %v5317_v44, %v5335_v42 }
 0x218   : > { %v2693_v21 = vsel %vm2681_vm2, %v2691_v23, %v2692_v8  ;;  %v2639_v57 = vadd.f32 %v2575_v17, %v2370_v36  ;;  %v2345_v25 = vadd.f32 %v3895_v18, %v2281_v22  ;;  %v2403_v56 = vsel %vm2387_vm1, %v2401_v0, %v2402_v46 }
 0x219   : > { %v2759_v32 = vadd.f32 %v2693_v21, %v2636_v11  ;;  %v2696_v10 = vrot.slane %v2495_v62, 1  ;;  %v2469_v12 = vadd.f32 %v3895_v18, %v2403_v56  ;;  %v2572_v38 = vrot.slane %v2518_v7, 2  ;;  %v5399_v48 = vpop.f32.mrb[16].mxu1  ;;  %v5401_v34 = vpop.f32.mrb[18].mxu0 }
 0x21a   : > { %v2369_v35 = vmul.f32 0.054488685, %v2345_v25  ;;  %v2284_v19 = vrot.slane %v3896_v4, 4  ;;  %v2406_v16 = vrot.slane %v3896_v4, 2  ;;  %v2521_v41 = vmul.f32 0.40261996, %v3896_v4 }
 0x21b   : > { %2783 = vst [vmem:[%s5326_s18 + $0x20] sm:$0xff] %v2759_v32  ;;  %v2698_v44 = vsel %vm2681_vm2, %v2696_v10, %v5296_v55  ;;  %v2494_v42 = vmul.f32 0.24420135, %v2469_v12  ;;  %v2574_v46 = vsel %vm2387_vm1, %v2572_v38, %v2573_v26  ;;  %v3897_v18 = vadd.f32 %v5320_v53, %v5341_v47  ;;  %v5409_v8 = vpop.f32.mrb[17].mxu1  ;;  %v5411_v39 = vpop.f32.mrb[19].mxu0 }
 0x21c   : > { %v2762_v40 = vadd.f32 %v2698_v44, %v2639_v57  ;;  %v2638_v13 = vadd.f32 %v2574_v46, %v2369_v35  ;;  %v2286_v31 = vsel %vm2265_vm0, %v2284_v19, %v5294_v5  ;;  %v2408_v6 = vsel %vm2387_vm1, %v2406_v16, %v5291_v3 }
 0x21d   : > { %v2695_v54 = vrot.slane %v2494_v42, 1  ;;  %v2348_v24 = vadd.f32 %v3896_v4, %v2286_v31  ;;  %v2472_v51 = vadd.f32 %v3896_v4, %v2408_v6  ;;  %v2577_v49 = vrot.slane %v2521_v41, 2  ;;  %v5417_v2 = vpop.f32.mrb[18].mxu1  ;;  %v5419_v59 = vpop.f32.mrb[20].mxu0 }
 0x21e   : > { %2786 = vst [vmem:[%s5326_s18 + $0x38] sm:$0xff] %v2762_v40  ;;  %v2283_v53 = vrot.slane %v3897_v18, 4  ;;  %v2405_v47 = vrot.slane %v3897_v18, 2  ;;  %v2520_v61 = vmul.f32 0.40261996, %v3897_v18  ;;  %v3898_v29 = vadd.f32 %v5337_v60, %v5356_v1  ;;  %v5424_v28 = vpop.f32.mrb[19].mxu1 }
 0x21f   : > { %v5426_v36 = vpop.f32.mrb[21].mxu0  ;;  %v2697_v33 = vsel %vm2681_vm2, %v2695_v54, %v2696_v10  ;;  %v2372_v26 = vmul.f32 0.054488685, %v2348_v24  ;;  %v2497_v27 = vmul.f32 0.24420135, %v2472_v51  ;;  %v2579_v11 = vsel %vm2387_vm1, %v2577_v49, %v5291_v3 }
 0x220   : > { %v2761_v23 = vadd.f32 %v2697_v33, %v2638_v13  ;;  %v2285_v0 = vsel %vm2265_vm0, %v2283_v53, %v2284_v19  ;;  %v2407_v7 = vsel %vm2387_vm1, %v2405_v47, %v2406_v16  ;;  %v2576_v62 = vrot.slane %v2520_v61, 2 }
 0x221   : > { %v2641_v17 = vadd.f32 %v2579_v11, %v2372_v26  ;;  %v2700_v60 = vrot.slane %v2497_v27, 1  ;;  %v2347_v1 = vadd.f32 %v3897_v18, %v2285_v0  ;;  %v2471_v22 = vadd.f32 %v3897_v18, %v2407_v7  ;;  %v5433_v4 = vpop.f32.mrb[20].mxu1  ;;  %v5435_v21 = vpop.f32.mrb[22].mxu0 }
 0x222   : > { %2785 = vst [vmem:[%s5326_s18 + $0x30] sm:$0xff] %v2761_v23  ;;  %v2578_v57 = vsel %vm2387_vm1, %v2576_v62, %v2577_v49  ;;  %v2288_v25 = vrot.slane %v3898_v29, 4  ;;  %v2410_v56 = vrot.slane %v3898_v29, 2  ;;  %v2523_v32 = vmul.f32 0.40261996, %v3898_v29  ;;  %v5439_v10 = vpop.f32.mrb[21].mxu1 }
 0x223   : > { %v5441_v12 = vpop.f32.mrb[23].mxu0  ;;  %v2702_v38 = vsel %vm2681_vm2, %v2700_v60, %v5296_v55  ;;  %v2371_v35 = vmul.f32 0.054488685, %v2347_v1  ;;  %v2496_v19 = vmul.f32 0.24420135, %v2471_v22  ;;  %v3899_v16 = vadd.f32 %v5343_v58, %v5360_v20 }
 0x224   : > { %v2764_v41 = vadd.f32 %v2702_v38, %v2641_v17  ;;  %v2290_v44 = vsel %vm2265_vm0, %v2288_v25, %v5294_v5  ;;  %v2412_v42 = vsel %vm2387_vm1, %v2410_v56, %v5291_v3  ;;  %v2581_v46 = vrot.slane %v2523_v32, 2 }
 0x225   : > { %v2640_v18 = vadd.f32 %v2578_v57, %v2371_v35  ;;  %v2699_v40 = vrot.slane %v2496_v19, 1  ;;  %v2350_v13 = vadd.f32 %v3898_v29, %v2290_v44  ;;  %v2474_v31 = vadd.f32 %v3898_v29, %v2412_v42  ;;  %v5451_v6 = vpop.f32.mrb[22].mxu1 }
 0x226   : > { %2788 = vst [vmem:[%s5326_s18 + $0x48] sm:$0xff] %v2764_v41  ;;  %v2583_v54 = vsel %vm2387_vm1, %v2581_v46, %v5291_v3  ;;  %v2287_v24 = vrot.slane %v3899_v16, 4  ;;  %v2409_v58 = vrot.slane %v3899_v16, 2  ;;  %v2522_v20 = vmul.f32 0.40261996, %v3899_v16  ;;  %v5456_v51 = vpop.f32.mrb[23].mxu1 }
 0x227   : > { %v2701_v49 = vsel %vm2681_vm2, %v2699_v40, %v2700_v60  ;;  %v2374_v53 = vmul.f32 0.054488685, %v2350_v13  ;;  %v2499_v47 = vmul.f32 0.24420135, %v2474_v31  ;;  %v3900_v61 = vadd.f32 %v5358_v63, %v5367_v43 }
 0x228   : > { %v2763_v29 = vadd.f32 %v2701_v49, %v2640_v18  ;;  %v2289_v33 = vsel %vm2265_vm0, %v2287_v24, %v2288_v25  ;;  %v2411_v26 = vsel %vm2387_vm1, %v2409_v58, %v2410_v56  ;;  %v2580_v27 = vrot.slane %v2522_v20, 2 }
 0x229   : > { %v2643_v11 = vadd.f32 %v2583_v54, %v2374_v53  ;;  %v2704_v23 = vrot.slane %v2499_v47, 1  ;;  %v2349_v0 = vadd.f32 %v3899_v16, %v2289_v33  ;;  %v2473_v7 = vadd.f32 %v3899_v16, %v2411_v26 }
 0x22a   : > { %2787 = vst [vmem:[%s5326_s18 + $0x40] sm:$0xff] %v2763_v29  ;;  %v2582_v62 = vsel %vm2387_vm1, %v2580_v27, %v2581_v46  ;;  %v2292_v17 = vrot.slane %v3900_v61, 4  ;;  %v2414_v60 = vrot.slane %v3900_v61, 2  ;;  %v2525_v1 = vmul.f32 0.40261996, %v3900_v61 }
 0x22b   : > { %v2706_v63 = vsel %vm2681_vm2, %v2704_v23, %v5296_v55  ;;  %v2373_v43 = vmul.f32 0.054488685, %v2349_v0  ;;  %v2498_v22 = vmul.f32 0.24420135, %v2473_v7  ;;  %v3901_v57 = vadd.f32 %v5362_v37, %v5373_v14 }
 0x22c   : > { %v2766_v25 = vadd.f32 %v2706_v63, %v2643_v11  ;;  %v2294_v56 = vsel %vm2265_vm0, %v2292_v17, %v5294_v5  ;;  %v2416_v32 = vsel %vm2387_vm1, %v2414_v60, %v5291_v3  ;;  %v2585_v38 = vrot.slane %v2525_v1, 2 }
 0x22d   : > { %v2642_v35 = vadd.f32 %v2582_v62, %v2373_v43  ;;  %v2703_v19 = vrot.slane %v2498_v22, 1  ;;  %v2352_v16 = vadd.f32 %v3900_v61, %v2294_v56  ;;  %v2476_v41 = vadd.f32 %v3900_v61, %v2416_v32 }
 0x22e   : > { %2790 = vst [vmem:[%s5326_s18 + $0x58] sm:$0xff] %v2766_v25  ;;  %v2587_v44 = vsel %vm2387_vm1, %v2585_v38, %v5291_v3  ;;  %v2291_v42 = vrot.slane %v3901_v57, 4  ;;  %v2413_v46 = vrot.slane %v3901_v57, 2  ;;  %v2524_v37 = vmul.f32 0.40261996, %v3901_v57 }
 0x22f   : > { %v2705_v14 = vsel %vm2681_vm2, %v2703_v19, %v2704_v23  ;;  %v2376_v18 = vmul.f32 0.054488685, %v2352_v16  ;;  %v2501_v40 = vmul.f32 0.24420135, %v2476_v41  ;;  %v3902_v13 = vadd.f32 %v5369_v9, %v5383_v52 }
 0x230   : > { %v2765_v31 = vadd.f32 %v2705_v14, %v2642_v35  ;;  %v2293_v54 = vsel %vm2265_vm0, %v2291_v42, %v2292_v17  ;;  %v2415_v24 = vsel %vm2387_vm1, %v2413_v46, %v2414_v60  ;;  %v2584_v58 = vrot.slane %v2524_v37, 2 }
 0x231   : > { %v2645_v20 = vadd.f32 %v2587_v44, %v2376_v18  ;;  %v2708_v49 = vrot.slane %v2501_v40, 1  ;;  %v2351_v53 = vadd.f32 %v3901_v57, %v2293_v54  ;;  %v2475_v47 = vadd.f32 %v3901_v57, %v2415_v24 }
 0x232   : > { %2789 = vst [vmem:[%s5326_s18 + $0x50] sm:$0xff] %v2765_v31  ;;  %v2586_v61 = vsel %vm2387_vm1, %v2584_v58, %v2585_v38  ;;  %v2296_v29 = vrot.slane %v3902_v13, 4  ;;  %v2418_v33 = vrot.slane %v3902_v13, 2  ;;  %v2527_v26 = vmul.f32 0.40261996, %v3902_v13 }
 0x233   : > { %v2710_v9 = vsel %vm2681_vm2, %v2708_v49, %v5296_v55  ;;  %v2375_v52 = vmul.f32 0.054488685, %v2351_v53  ;;  %v2500_v27 = vmul.f32 0.24420135, %v2475_v47  ;;  %v3903_v11 = vadd.f32 %v5375_v45, %v5388_v30 }
 0x234   : > { %v2768_v23 = vadd.f32 %v2710_v9, %v2645_v20  ;;  %v2298_v0 = vsel %vm2265_vm0, %v2296_v29, %v5294_v5  ;;  %v2420_v7 = vsel %vm2387_vm1, %v2418_v33, %v5291_v3  ;;  %v2589_v62 = vrot.slane %v2527_v26, 2 }
 0x235   : > { %v2644_v17 = vadd.f32 %v2586_v61, %v2375_v52  ;;  %v2707_v60 = vrot.slane %v2500_v27, 1  ;;  %v2354_v1 = vadd.f32 %v3902_v13, %v2298_v0  ;;  %v2478_v63 = vadd.f32 %v3902_v13, %v2420_v7 }
 0x236   : > { %2792 = vst [vmem:[%s5326_s18 + $0x68] sm:$0xff] %v2768_v23  ;;  %v2591_v43 = vsel %vm2387_vm1, %v2589_v62, %v5291_v3  ;;  %v2295_v22 = vrot.slane %v3903_v11, 4  ;;  %v2417_v57 = vrot.slane %v3903_v11, 2  ;;  %v2526_v45 = vmul.f32 0.40261996, %v3903_v11 }
 0x237   : > { %v2709_v30 = vsel %vm2681_vm2, %v2707_v60, %v2708_v49  ;;  %v2378_v25 = vmul.f32 0.054488685, %v2354_v1  ;;  %v2503_v56 = vmul.f32 0.24420135, %v2478_v63  ;;  %v3904_v32 = vadd.f32 %v5385_v50, %v5399_v48 }
 0x238   : > { %v2767_v38 = vadd.f32 %v2709_v30, %v2644_v17  ;;  %v2297_v35 = vsel %vm2265_vm0, %v2295_v22, %v2296_v29  ;;  %v2419_v19 = vsel %vm2387_vm1, %v2417_v57, %v2418_v33  ;;  %v2588_v16 = vrot.slane %v2526_v45, 2 }
 0x239   : > { %v2647_v41 = vadd.f32 %v2591_v43, %v2378_v25  ;;  %v2712_v44 = vrot.slane %v2503_v56, 1  ;;  %v2353_v42 = vadd.f32 %v3903_v11, %v2297_v35  ;;  %v2477_v46 = vadd.f32 %v3903_v11, %v2419_v19 }
 0x23a   : > { %2791 = vst [vmem:[%s5326_s18 + $0x60] sm:$0xff] %v2767_v38  ;;  %v2590_v37 = vsel %vm2387_vm1, %v2588_v16, %v2589_v62  ;;  %v2300_v14 = vrot.slane %v3904_v32, 4  ;;  %v2422_v18 = vrot.slane %v3904_v32, 2  ;;  %v2529_v40 = vmul.f32 0.40261996, %v3904_v32 }
 0x23b   : > { %v2714_v50 = vsel %vm2681_vm2, %v2712_v44, %v5296_v55  ;;  %v2377_v48 = vmul.f32 0.054488685, %v2353_v42  ;;  %v2502_v13 = vmul.f32 0.24420135, %v2477_v46  ;;  %v3905_v31 = vadd.f32 %v5390_v15, %v5409_v8 }
 0x23c   : > { %v2770_v54 = vadd.f32 %v2714_v50, %v2647_v41  ;;  %v2302_v24 = vsel %vm2265_vm0, %v2300_v14, %v5294_v5  ;;  %v2424_v58 = vsel %vm2387_vm1, %v2422_v18, %v5291_v3  ;;  %v2593_v20 = vrot.slane %v2529_v40, 2 }
 0x23d   : > { %v2646_v49 = vadd.f32 %v2590_v37, %v2377_v48  ;;  %v2711_v53 = vrot.slane %v2502_v13, 1  ;;  %v2356_v47 = vadd.f32 %v3904_v32, %v2302_v24  ;;  %v2480_v61 = vadd.f32 %v3904_v32, %v2424_v58 }
 0x23e   : > { %2794 = vst [vmem:[%s5326_s18 + $0x78] sm:$0xff] %v2770_v54  ;;  %v2595_v29 = vsel %vm2387_vm1, %v2593_v20, %v5291_v3  ;;  %v2299_v33 = vrot.slane %v3905_v31, 4  ;;  %v2421_v26 = vrot.slane %v3905_v31, 2  ;;  %v2528_v15 = vmul.f32 0.40261996, %v3905_v31 }
 0x23f   : > { %v2713_v8 = vsel %vm2681_vm2, %v2711_v53, %v2712_v44  ;;  %v2380_v9 = vmul.f32 0.054488685, %v2356_v47  ;;  %v2505_v52 = vmul.f32 0.24420135, %v2480_v61  ;;  %v3906_v27 = vadd.f32 %v5401_v34, %v5417_v2 }
 0x240   : > { %v2769_v11 = vadd.f32 %v2713_v8, %v2646_v49  ;;  %v2301_v23 = vsel %vm2265_vm0, %v2299_v33, %v2300_v14  ;;  %v2423_v0 = vsel %vm2387_vm1, %v2421_v26, %v2422_v18  ;;  %v2592_v7 = vrot.slane %v2528_v15, 2 }
 0x241   : > { %v2649_v62 = vadd.f32 %v2595_v29, %v2380_v9  ;;  %v2716_v17 = vrot.slane %v2505_v52, 1  ;;  %v2355_v60 = vadd.f32 %v3905_v31, %v2301_v23  ;;  %v2479_v1 = vadd.f32 %v3905_v31, %v2423_v0 }
 0x242   : > { %2793 = vst [vmem:[%s5326_s18 + $0x70] sm:$0xff] %v2769_v11  ;;  %v2594_v63 = vsel %vm2387_vm1, %v2592_v7, %v2593_v20  ;;  %v2304_v43 = vrot.slane %v3906_v27, 4  ;;  %v2426_v22 = vrot.slane %v3906_v27, 2  ;;  %v2531_v57 = vmul.f32 0.40261996, %v3906_v27 }
 0x243   : > { %v2718_v34 = vsel %vm2681_vm2, %v2716_v17, %v5296_v55  ;;  %v2379_v2 = vmul.f32 0.054488685, %v2355_v60  ;;  %v2504_v45 = vmul.f32 0.24420135, %v2479_v1  ;;  %v3907_v30 = vadd.f32 %v5411_v39, %v5424_v28 }
 0x244   : > { %v2772_v25 = vadd.f32 %v2718_v34, %v2649_v62  ;;  %v2306_v56 = vsel %vm2265_vm0, %v2304_v43, %v5294_v5  ;;  %v2428_v32 = vsel %vm2387_vm1, %v2426_v22, %v5291_v3  ;;  %v2597_v38 = vrot.slane %v2531_v57, 2 }
 0x245   : > { %v2648_v35 = vadd.f32 %v2594_v63, %v2379_v2  ;;  %v2715_v19 = vrot.slane %v2504_v45, 1  ;;  %v2358_v16 = vadd.f32 %v3906_v27, %v2306_v56  ;;  %v2482_v41 = vadd.f32 %v3906_v27, %v2428_v32 }
 0x246   : > { %2796 = vst [vmem:[%s5326_s18 + $0x88] sm:$0xff] %v2772_v25  ;;  %v2599_v44 = vsel %vm2387_vm1, %v2597_v38, %v5291_v3  ;;  %v2303_v42 = vrot.slane %v3907_v30, 4  ;;  %v2425_v46 = vrot.slane %v3907_v30, 2  ;;  %v2530_v39 = vmul.f32 0.40261996, %v3907_v30 }
 0x247   : > { %v2717_v28 = vsel %vm2681_vm2, %v2715_v19, %v2716_v17  ;;  %v2382_v37 = vmul.f32 0.054488685, %v2358_v16  ;;  %v2507_v14 = vmul.f32 0.24420135, %v2482_v41  ;;  %v3908_v18 = vadd.f32 %v5419_v59, %v5433_v4 }
 0x248   : > { %v2771_v40 = vadd.f32 %v2717_v28, %v2648_v35  ;;  %v2305_v50 = vsel %vm2265_vm0, %v2303_v42, %v2304_v43  ;;  %v2427_v48 = vsel %vm2387_vm1, %v2425_v46, %v2426_v22  ;;  %v2596_v13 = vrot.slane %v2530_v39, 2 }
 0x249   : > { %v2651_v31 = vadd.f32 %v2599_v44, %v2382_v37  ;;  %v2720_v54 = vrot.slane %v2507_v14, 1  ;;  %v2357_v24 = vadd.f32 %v3907_v30, %v2305_v50  ;;  %v2481_v58 = vadd.f32 %v3907_v30, %v2427_v48 }
 0x24a   : > { %2795 = vst [vmem:[%s5326_s18 + $0x80] sm:$0xff] %v2771_v40  ;;  %v2598_v20 = vsel %vm2387_vm1, %v2596_v13, %v2597_v38  ;;  %v2308_v49 = vrot.slane %v3908_v18, 4  ;;  %v2430_v53 = vrot.slane %v3908_v18, 2  ;;  %v2533_v47 = vmul.f32 0.40261996, %v3908_v18 }
 0x24b   : > { %v2722_v59 = vsel %vm2681_vm2, %v2720_v54, %v5296_v55  ;;  %v2381_v4 = vmul.f32 0.054488685, %v2357_v24  ;;  %v2506_v61 = vmul.f32 0.24420135, %v2481_v58  ;;  %v3909_v29 = vadd.f32 %v5426_v36, %v5439_v10 }
 0x24c   : > { %v2774_v33 = vadd.f32 %v2722_v59, %v2651_v31  ;;  %v2310_v26 = vsel %vm2265_vm0, %v2308_v49, %v5294_v5  ;;  %v2432_v15 = vsel %vm2387_vm1, %v2430_v53, %v5291_v3  ;;  %v2601_v8 = vrot.slane %v2533_v47, 2 }
 0x24d   : > { %v2650_v9 = vadd.f32 %v2598_v20, %v2381_v4  ;;  %v2719_v52 = vrot.slane %v2506_v61, 1  ;;  %v2360_v27 = vadd.f32 %v3908_v18, %v2310_v26  ;;  %v2484_v11 = vadd.f32 %v3908_v18, %v2432_v15 }
 0x24e   : > { %2798 = vst [vmem:[%s5326_s18 + $0x98] sm:$0xff] %v2774_v33  ;;  %v2603_v23 = vsel %vm2387_vm1, %v2601_v8, %v5291_v3  ;;  %v2307_v0 = vrot.slane %v3909_v29, 4  ;;  %v2429_v7 = vrot.slane %v3909_v29, 2  ;;  %v2532_v36 = vmul.f32 0.40261996, %v3909_v29 }
 0x24f   : > { %v2721_v10 = vsel %vm2681_vm2, %v2719_v52, %v2720_v54  ;;  %v2384_v62 = vmul.f32 0.054488685, %v2360_v27  ;;  %v2509_v17 = vmul.f32 0.24420135, %v2484_v11  ;;  %v3910_v60 = vadd.f32 %v5435_v21, %v5451_v6 }
 0x250   : > { %v2773_v1 = vadd.f32 %v2721_v10, %v2650_v9  ;;  %v2309_v63 = vsel %vm2265_vm0, %v2307_v0, %v2308_v49  ;;  %v2431_v43 = vsel %vm2387_vm1, %v2429_v7, %v2430_v53  ;;  %v2600_v22 = vrot.slane %v2532_v36, 2 }
 0x251   : > { %v2653_v57 = vadd.f32 %v2603_v23, %v2384_v62  ;;  %v2724_v34 = vrot.slane %v2509_v17, 1  ;;  %v2359_v2 = vadd.f32 %v3909_v29, %v2309_v63  ;;  %v2483_v45 = vadd.f32 %v3909_v29, %v2431_v43 }
 0x252   : > { %2797 = vst [vmem:[%s5326_s18 + $0x90] sm:$0xff] %v2773_v1  ;;  %v2602_v30 = vsel %vm2387_vm1, %v2600_v22, %v2601_v8  ;;  %v2312_v25 = vrot.slane %v3910_v60, 4  ;;  %v2434_v56 = vrot.slane %v3910_v60, 2  ;;  %v2535_v32 = vmul.f32 0.40261996, %v3910_v60 }
 0x253   : > { %v2726_v21 = vsel %vm2681_vm2, %v2724_v34, %v5296_v55  ;;  %v2383_v6 = vmul.f32 0.054488685, %v2359_v2  ;;  %v2508_v38 = vmul.f32 0.24420135, %v2483_v45  ;;  %v3911_v35 = vadd.f32 %v5441_v12, %v5456_v51 }
 0x254   : > { %v2776_v19 = vadd.f32 %v2726_v21, %v2653_v57  ;;  %v2314_v16 = vsel %vm2265_vm0, %v2312_v25, %v5294_v5  ;;  %v2436_v41 = vsel %vm2387_vm1, %v2434_v56, %v5291_v3  ;;  %v2605_v44 = vrot.slane %v2535_v32, 2 }
 0x255   : > { %v2652_v42 = vadd.f32 %v2602_v30, %v2383_v6  ;;  %v2723_v46 = vrot.slane %v2508_v38, 1  ;;  %v2362_v39 = vadd.f32 %v3910_v60, %v2314_v16  ;;  %v2486_v28 = vadd.f32 %v3910_v60, %v2436_v41 }
 0x256   : > { %2800 = vst [vmem:[%s5326_s18 + $0xa8] sm:$0xff] %v2776_v19  ;;  %v2311_v37 = vrot.slane %v3911_v35, 4  ;;  %v2433_v14 = vrot.slane %v3911_v35, 2  ;;  %v2534_v18 = vmul.f32 0.40261996, %v3911_v35  ;;  %v2607_v5 = vsel %vm2387_vm1, %v2605_v44, %v5291_v3 }
 0x257   : > { %v2725_v40 = vsel %vm2681_vm2, %v2723_v46, %v2724_v34  ;;  %v2386_v12 = vmul.f32 0.054488685, %v2362_v39  ;;  %v2511_v51 = vmul.f32 0.24420135, %v2486_v28 }
 0x258   : > { %v2775_v50 = vadd.f32 %v2725_v40, %v2652_v42  ;;  %v2313_v48 = vsel %vm2265_vm0, %v2311_v37, %v2312_v25  ;;  %v2435_v13 = vsel %vm2387_vm1, %v2433_v14, %v2434_v56  ;;  %v2604_v31 = vrot.slane %v2534_v18, 2 }
 0x259   : > { %v2655_v54 = vadd.f32 %v2607_v5, %v2386_v12  ;;  %v2728_v24 = vrot.slane %v2511_v51, 1  ;;  %v2361_v58 = vadd.f32 %v3911_v35, %v2313_v48  ;;  %v2485_v20 = vadd.f32 %v3911_v35, %v2435_v13 }
 0x25a   : > { %2799 = vst [vmem:[%s5326_s18 + $0xa0] sm:$0xff] %v2775_v50  ;;  %v2606_v49 = vsel %vm2387_vm1, %v2604_v31, %v2605_v44 }
 0x25b   : > { %v2730_v3 = vsel %vm2681_vm2, %v2728_v24, %v5296_v55  ;;  %v2385_v53 = vmul.f32 0.054488685, %v2361_v58  ;;  %v2510_v47 = vmul.f32 0.24420135, %v2485_v20 }
 0x25c   : > { %v2778_v59 = vadd.f32 %v2730_v3, %v2655_v54 }
 0x25d   : > { %v2654_v4 = vadd.f32 %v2606_v49, %v2385_v53  ;;  %v2727_v61 = vrot.slane %v2510_v47, 1 }
 0x25e   : > { %2802 = vst [vmem:[%s5326_s18 + $0xb8] sm:$0xff] %v2778_v59 }
 0x25f   : > { %v2729_v29 = vsel %vm2681_vm2, %v2727_v61, %v2728_v24 }
 0x260   : > { %v2777_v55 = vadd.f32 %v2729_v29, %v2654_v4 }
 0x262   : > { %2801 = vst [vmem:[%s5326_s18 + $0xb0] sm:$0xff] %v2777_v55 }
 0x263   : > { %4196 = shalt.err (!%p4193_p8)
}
 0x264   : > { %s4197_s5 = scalar_lea.hbm %s5580_s8, 3072  ;;  %s4201_s30 = scalar_lea.hbm %s5635_s3, 6144 }
 0x265   : > { %p4198_p11 = scmp.ne.s32.totalorder %s5580_s8, %s4197_s5  ;;  %p4202_p6 = scmp.lt.u32.totalorder %s5580_s8, %s5635_s3 }
 0x266   : > { %p4203_p13 = scmp.lt.u32.totalorder %s4201_s30, %s4197_s5  ;;  %p4205_p5 = scmp.lt.u32.totalorder %s4197_s5, %s5580_s8 }
 0x267   : > { %p4199_p12 = pnand %p4198_p11, %p4399_p10 }
 0x268   : > { %p4204_p0 = por %p4203_p13, %p4202_p6 }
 0x269   : > { %p4200_p3 = pneg %p4199_p12 }
 0x26a   : > { %p4206_p9 = por %p4205_p5, %p4204_p0 }
 0x26c   : > { %p4207_p1 = pnand %p4206_p9, %p4200_p3 }
 0x26e   : > { %4210 = shalt.err (!%p4207_p1)
}
 0x26f   : > { %s4282_s9 = smov 128   ;;  %s4283_s28 = smov 8  }
 0x270   : > { %4019 = dma.vmem_to_hbm [thread:$0]  (%p4399_p10), %s5582_s27, 3072, %s5580_s8, %s2804_s15, %s4282_s9, %s4282_s9, %s4283_s28  }
 0x271 PF: > { %s2837_s7 = sand.u32 1, %s4253_s12   ;;  %p5796_p2 = scmp.ne.s32.totalorder %s5704_s21, 0 }
 0x272   : > { %p5797_p7 = scmp.ge.s32.totalorder %s4273_s17, 2  ;;  %s2838_s18 = scalar_lea.sflag [#allocation4], %s2837_s7 }
 0x274   : > { %p4033_p4 = pnand %p5797_p7, %p5796_p2 }
 0x276   : > { %4248 = dma.done.wait (!%p4033_p4), %s2838_s18, 3072  }
 0x277   : > { %4250 = vsyncadd (!%p4033_p4), %s2838_s18, 4294964224  ;;  %s22_s17 = sadd.s32 1, %s4273_s17   ;;  %s5798_s25 = sld [smem:[#allocation13_spill]] }
 0x278   : > { %p19_p8 = scmp.ge.s32.totalorder %s22_s17, 4   ;;  %s5799_s12 = smov %s4257_s13 }
 0x279   : > { %s5800_s13 = smov %s4261_s14  ;;  %s5801_s14 = smov %s4411_s29 }
 0x27a   : > { %s5802_s15 = smov %s4269_s16  ;;  %21 = sbr.rel (!%p19_p8) target bundleno = 11 (0xb), region = 98 }
 0x27d   : > { %s5803_s16 = smov %s5798_s25 }
 0x281   :  { %2843 = vsyncpa [#allocation3], 1 }
 0x282   :  { %2845 = vsyncpa [#allocation3 + $0x1], 1 }
 0x283   :  { %2846 = vsyncpa [#allocation6], 1 }
 0x284   :  { %2848 = vsyncpa [#allocation6 + $0x1], 1 }
 0x285   :  { %2849 = vsyncpa [#allocation4], 1 }
 0x286   :  { %2851 = vsyncpa [#allocation4 + $0x1], 1 }

</bundles_post_ra>
